<compile_context>
chip_gen: v6e
topology: v6e:2x2x1
jax: 0.10.0
libtpu: 0.0.40
codegen_flags: <defaults>
</compile_context>

<pallas_src>
import jax
import jax.numpy as jnp
from jax.experimental import pallas as pl
from jax.experimental.pallas import tpu as pltpu

FEAT = 96                 # per-view feature width (1152 / 12)
NSEG = 12                 # number of 96-wide feature segments
H1, H2, OUT = 512, 128, 2
OUT_PAD = 128             # lane-dense padded width of the final layer


def _round_up(x, m):
    return (x + m - 1) // m * m


def _sim_kernel(head_ref, pos_ref, neg_ref, body_ref,
                w1s_ref, b1_ref, w2_ref, b2_ref, w3_ref, b3_ref,
                out_ref):
    head = head_ref[...]
    pos = pos_ref[...]
    neg = neg_ref[...]
    body = body_ref[...]

    # Pairwise "angle" / "diff" features.  Kept in f32 (v5e VPU has no bf16);
    # casting to bf16 happens only at the MXU dot inputs below.
    segs = (head, pos, neg, body,
            head * pos, jnp.abs(head + pos),
            head * body, jnp.abs(head + body),
            head * neg, jnp.abs(head + neg),
            pos * neg, jnp.abs(pos + neg))

    # Layer 1: instead of building the (TM, 1152) concat (every 96-wide segment
    # boundary straddles a vreg lane boundary -> XLU shuffles), accumulate 12
    # (TM,96)@(96,512) MXU dots into an f32 accumulator.
    acc = jnp.zeros((head.shape[0], H1), dtype=jnp.float32)
    for k, seg in enumerate(segs):
        acc += jnp.dot(seg.astype(jnp.bfloat16), w1s_ref[k],
                       preferred_element_type=jnp.float32)
    h1 = jax.nn.sigmoid(acc + b1_ref[...])          # bias broadcast (1,H1)->(TM,H1)

    # Layer 2.
    h2 = jax.nn.sigmoid(
        jnp.dot(h1.astype(jnp.bfloat16), w2_ref[...],
                preferred_element_type=jnp.float32) + b2_ref[...])

    # Layer 3, zero-padded to 128 output lanes -> unmasked, lane-dense store.
    out_ref[...] = (
        jnp.dot(h2.astype(jnp.bfloat16), w3_ref[...],
                preferred_element_type=jnp.float32) + b3_ref[...])


def similarity_sim(head, pos, neg, body, params, *, tm_max=512):
    """params = (w1, b1, w2, b2, w3, b3); weights (in, out) f32, biases (1, out) f32."""
    w1, b1, w2, b2, w3, b3 = params
    B = head.shape[0]

    # Batch tile: multiple of 8 sublanes, capped so bf16 weights (~1.3 MiB) +
    # double-buffered input tiles + intermediates stay well inside scoped VMEM
    # on every generation (v7x's 64 MiB physical included).
    tm = min(tm_max, _round_up(B, 8))
    b_pad = _round_up(B, tm)
    grid = (b_pad // tm,)

    def pad_rows(x):
        return jnp.pad(x, ((0, b_pad - B), (0, 0)))

    head_p, pos_p, neg_p, body_p = (pad_rows(x) for x in (head, pos, neg, body))

    # Weights shipped as bf16 (halves weight DMA bytes, native MXU rate); f32
    # accumulation is kept via preferred_element_type.  Biases stay f32.
    # w1 is pre-split into 12 (96, 512) slabs (row-major reshape == 96-row slabs).
    w1s = w1.reshape(NSEG, FEAT, H1).astype(jnp.bfloat16)
    w2b = w2.astype(jnp.bfloat16)
    w3p = jnp.zeros((H2, OUT_PAD), jnp.float32).at[:, :OUT].set(w3).astype(jnp.bfloat16)
    b3p = jnp.zeros((1, OUT_PAD), jnp.float32).at[:, :OUT].set(b3)

    act_spec = pl.BlockSpec((tm, FEAT), lambda i: (i, 0))
    # Weight/bias blocks: full-array block + constant index map -> VMEM-resident,
    # no re-DMA across grid steps.
    res = lambda shape: pl.BlockSpec(shape, lambda i, _s=shape: (0,) * len(_s))

    flops = 2 * b_pad * (NSEG * FEAT * H1 + H1 * H2 + H2 * OUT_PAD)
    bytes_accessed = ((w1s.size + w2b.size + w3p.size) * 2
                      + (b1.size + b2.size + b3p.size) * 4
                      + b_pad * (4 * FEAT + OUT_PAD) * 4)
    cost = pl.CostEstimate(flops=flops,
                           transcendentals=b_pad * (H1 + H2),
                           bytes_accessed=bytes_accessed)

    out = pl.pallas_call(
        _sim_kernel,
        out_shape=jax.ShapeDtypeStruct((b_pad, OUT_PAD), jnp.float32),
        grid=grid,
        in_specs=[act_spec, act_spec, act_spec, act_spec,
                  res((NSEG, FEAT, H1)), res((1, H1)),
                  res((H1, H2)), res((1, H2)),
                  res((H2, OUT_PAD)), res((1, OUT_PAD))],
        out_specs=pl.BlockSpec((tm, OUT_PAD), lambda i: (i, 0)),
        compiler_params=pltpu.CompilerParams(
            dimension_semantics=("parallel",),        # shards batch across TCs on v7x
            vmem_limit_bytes=32 * 1024 * 1024),
        cost_estimate=cost,
    )(head_p, pos_p, neg_p, body_p, w1s, b1, w2b, b2, w3p, b3p)

    return out[:B, :OUT]


def _feat(head, pos, neg, body):
    return jnp.concatenate(
        [head, pos, neg, body,
         head * pos, jnp.abs(head + pos),
         head * body, jnp.abs(head + body),
         head * neg, jnp.abs(head + neg),
         pos * neg, jnp.abs(pos + neg)], axis=1)


def _reference_f32(head, pos, neg, body, params):
    w1, b1, w2, b2, w3, b3 = params
    feat = _feat(head, pos, neg, body)
    h1 = jax.nn.sigmoid(feat @ w1 + b1)
    h2 = jax.nn.sigmoid(h1 @ w2 + b2)
    return h2 @ w3 + b3


def _reference_bf16(head, pos, neg, body, params):
    # Mirrors the kernel's bf16-operand / f32-accumulate math.
    w1, b1, w2, b2, w3, b3 = params
    bf = jnp.bfloat16
    feat = _feat(head, pos, neg, body).astype(bf)
    h1 = jax.nn.sigmoid(jnp.dot(feat, w1.astype(bf),
                                preferred_element_type=jnp.float32) + b1)
    h2 = jax.nn.sigmoid(jnp.dot(h1.astype(bf), w2.astype(bf),
                                preferred_element_type=jnp.float32) + b2)
    return jnp.dot(h2.astype(bf), w3.astype(bf),
                   preferred_element_type=jnp.float32) + b3


def _init_params(key):
    # Deterministic synthetic init (matches PyTorch Linear shapes, pre-transposed).
    ks = jax.random.split(key, 6)

    def lin(kw, kb, fan_in, fan_out):
        bound = 1.0 / (fan_in ** 0.5)
        w = jax.random.uniform(kw, (fan_in, fan_out), jnp.float32, -bound, bound)
        b = jax.random.uniform(kb, (1, fan_out), jnp.float32, -bound, bound)
        return w, b

    w1, b1 = lin(ks[0], ks[1], NSEG * FEAT, H1)
    w2, b2 = lin(ks[2], ks[3], H1, H2)
    w3, b3 = lin(ks[4], ks[5], H2, OUT)
    return (w1, b1, w2, b2, w3, b3)


if __name__ == "__main__":
    key = jax.random.PRNGKey(0)
    k_in, k_par = jax.random.split(key)
    params = _init_params(k_par)

    # (B=8, tm_max=512): single-tile path.  (B=40, tm_max=16): 3-step grid with
    # row padding, exercising the pipelined/tiled path at small shapes.
    for B, tm_max in ((8, 512), (40, 16)):
        kh, kp, kn, kb = jax.random.split(jax.random.fold_in(k_in, B), 4)
        head = jax.random.normal(kh, (B, FEAT), jnp.float32)
        pos = jax.random.normal(kp, (B, FEAT), jnp.float32)
        neg = jax.random.normal(kn, (B, FEAT), jnp.float32)
        body = jax.random.normal(kb, (B, FEAT), jnp.float32)

        out = jax.block_until_ready(
            similarity_sim(head, pos, neg, body, params, tm_max=tm_max))
        assert out.shape == (B, OUT)

        ref_bf16 = _reference_bf16(head, pos, neg, body, params)
        ref_f32 = _reference_f32(head, pos, neg, body, params)
        assert jnp.allclose(out, ref_bf16, atol=5e-3, rtol=5e-3), \
            float(jnp.max(jnp.abs(out - ref_bf16)))
        assert jnp.allclose(out, ref_f32, atol=3e-2, rtol=3e-2), \
            float(jnp.max(jnp.abs(out - ref_f32)))

    # TODO(synk): 'additive' and 'scaled' attention branches of Similarity are not
    # implemented; only the 'sim' branch (1152->512->128->2 MLP path) is covered.
    print("KERNEL_OK")
</pallas_src>

<mosaic_0001>
module attributes {stable_mosaic.version = 11 : i64} {
  func.func @_sim_kernel(%arg0: i32, %arg1: memref<8x96xf32, #tpu.memory_space<vmem>>, %arg2: memref<8x96xf32, #tpu.memory_space<vmem>>, %arg3: memref<8x96xf32, #tpu.memory_space<vmem>>, %arg4: memref<8x96xf32, #tpu.memory_space<vmem>>, %arg5: memref<12x96x512xbf16, #tpu.memory_space<vmem>>, %arg6: memref<1x512xf32, #tpu.memory_space<vmem>>, %arg7: memref<512x128xbf16, #tpu.memory_space<vmem>>, %arg8: memref<1x128xf32, #tpu.memory_space<vmem>>, %arg9: memref<128x128xbf16, #tpu.memory_space<vmem>>, %arg10: memref<1x128xf32, #tpu.memory_space<vmem>>, %arg11: memref<8x128xf32, #tpu.memory_space<vmem>>) attributes {dimension_semantics = [#tpu.dimension_semantics<parallel>], iteration_bounds = array<i64: 1>, scalar_prefetch = 0 : i64, scratch_operands = 0 : i64, tpu.core_type = #tpu.core_type<tc>, window_params = [{transform_indices = @transform_0, window_bounds = array<i64: 8, 96>}, {transform_indices = @transform_1, window_bounds = array<i64: 8, 96>}, {transform_indices = @transform_2, window_bounds = array<i64: 8, 96>}, {transform_indices = @transform_3, window_bounds = array<i64: 8, 96>}, {pipeline_mode = #tpu.pipeline_mode<synchronous>, transform_indices = @transform_4, window_bounds = array<i64: 12, 96, 512>}, {pipeline_mode = #tpu.pipeline_mode<synchronous>, transform_indices = @transform_5, window_bounds = array<i64: 1, 512>}, {pipeline_mode = #tpu.pipeline_mode<synchronous>, transform_indices = @transform_6, window_bounds = array<i64: 512, 128>}, {pipeline_mode = #tpu.pipeline_mode<synchronous>, transform_indices = @transform_7, window_bounds = array<i64: 1, 128>}, {pipeline_mode = #tpu.pipeline_mode<synchronous>, transform_indices = @transform_8, window_bounds = array<i64: 128, 128>}, {pipeline_mode = #tpu.pipeline_mode<synchronous>, transform_indices = @transform_9, window_bounds = array<i64: 1, 128>}, {transform_indices = @transform_10, window_bounds = array<i64: 8, 128>}]} {
    %c0 = arith.constant 0 : index
    %c0_0 = arith.constant 0 : index
    %0 = vector.load %arg1[%c0, %c0_0] : memref<8x96xf32, #tpu.memory_space<vmem>>, vector<8x96xf32>
    %c0_1 = arith.constant 0 : index
    %c0_2 = arith.constant 0 : index
    %1 = vector.load %arg2[%c0_1, %c0_2] : memref<8x96xf32, #tpu.memory_space<vmem>>, vector<8x96xf32>
    %c0_3 = arith.constant 0 : index
    %c0_4 = arith.constant 0 : index
    %2 = vector.load %arg3[%c0_3, %c0_4] : memref<8x96xf32, #tpu.memory_space<vmem>>, vector<8x96xf32>
    %c0_5 = arith.constant 0 : index
    %c0_6 = arith.constant 0 : index
    %3 = vector.load %arg4[%c0_5, %c0_6] : memref<8x96xf32, #tpu.memory_space<vmem>>, vector<8x96xf32>
    %4 = arith.mulf %0, %1 : vector<8x96xf32>
    %5 = arith.addf %0, %1 : vector<8x96xf32>
    %6 = math.absf %5 : vector<8x96xf32>
    %7 = arith.mulf %0, %3 : vector<8x96xf32>
    %8 = arith.addf %0, %3 : vector<8x96xf32>
    %9 = math.absf %8 : vector<8x96xf32>
    %10 = arith.mulf %0, %2 : vector<8x96xf32>
    %11 = arith.addf %0, %2 : vector<8x96xf32>
    %12 = math.absf %11 : vector<8x96xf32>
    %13 = arith.mulf %1, %2 : vector<8x96xf32>
    %14 = arith.addf %1, %2 : vector<8x96xf32>
    %15 = math.absf %14 : vector<8x96xf32>
    %cst = arith.constant 0.000000e+00 : f32
    %16 = vector.broadcast %cst : f32 to vector<8x512xf32>
    %17 = arith.truncf %0 : vector<8x96xf32> to vector<8x96xbf16>
    %c0_7 = arith.constant 0 : index
    %c0_8 = arith.constant 0 : index
    %c0_9 = arith.constant 0 : index
    %18 = vector.load %arg5[%c0_7, %c0_8, %c0_9] : memref<12x96x512xbf16, #tpu.memory_space<vmem>>, vector<1x96x512xbf16>
    %19 = vector.shape_cast %18 : vector<1x96x512xbf16> to vector<96x512xbf16>
    %cst_10 = arith.constant dense<0.000000e+00> : vector<8x512xf32>
    %20 = tpu.matmul %17, %19, %cst_10 {dimension_numbers = #tpu.dot_dimension_numbers<[1], [0], [0], [1], [0, 0, 1, 1], [], []>} : vector<8x96xbf16>, vector<96x512xbf16>, vector<8x512xf32> -> vector<8x512xf32>
    %21 = arith.addf %16, %20 : vector<8x512xf32>
    %22 = arith.truncf %1 : vector<8x96xf32> to vector<8x96xbf16>
    %c1 = arith.constant 1 : index
    %c0_11 = arith.constant 0 : index
    %c0_12 = arith.constant 0 : index
    %23 = vector.load %arg5[%c1, %c0_11, %c0_12] : memref<12x96x512xbf16, #tpu.memory_space<vmem>>, vector<1x96x512xbf16>
    %24 = vector.shape_cast %23 : vector<1x96x512xbf16> to vector<96x512xbf16>
    %cst_13 = arith.constant dense<0.000000e+00> : vector<8x512xf32>
    %25 = tpu.matmul %22, %24, %cst_13 {dimension_numbers = #tpu.dot_dimension_numbers<[1], [0], [0], [1], [0, 0, 1, 1], [], []>} : vector<8x96xbf16>, vector<96x512xbf16>, vector<8x512xf32> -> vector<8x512xf32>
    %26 = arith.addf %21, %25 : vector<8x512xf32>
    %27 = arith.truncf %2 : vector<8x96xf32> to vector<8x96xbf16>
    %c2 = arith.constant 2 : index
    %c0_14 = arith.constant 0 : index
    %c0_15 = arith.constant 0 : index
    %28 = vector.load %arg5[%c2, %c0_14, %c0_15] : memref<12x96x512xbf16, #tpu.memory_space<vmem>>, vector<1x96x512xbf16>
    %29 = vector.shape_cast %28 : vector<1x96x512xbf16> to vector<96x512xbf16>
    %cst_16 = arith.constant dense<0.000000e+00> : vector<8x512xf32>
    %30 = tpu.matmul %27, %29, %cst_16 {dimension_numbers = #tpu.dot_dimension_numbers<[1], [0], [0], [1], [0, 0, 1, 1], [], []>} : vector<8x96xbf16>, vector<96x512xbf16>, vector<8x512xf32> -> vector<8x512xf32>
    %31 = arith.addf %26, %30 : vector<8x512xf32>
    %32 = arith.truncf %3 : vector<8x96xf32> to vector<8x96xbf16>
    %c3 = arith.constant 3 : index
    %c0_17 = arith.constant 0 : index
    %c0_18 = arith.constant 0 : index
    %33 = vector.load %arg5[%c3, %c0_17, %c0_18] : memref<12x96x512xbf16, #tpu.memory_space<vmem>>, vector<1x96x512xbf16>
    %34 = vector.shape_cast %33 : vector<1x96x512xbf16> to vector<96x512xbf16>
    %cst_19 = arith.constant dense<0.000000e+00> : vector<8x512xf32>
    %35 = tpu.matmul %32, %34, %cst_19 {dimension_numbers = #tpu.dot_dimension_numbers<[1], [0], [0], [1], [0, 0, 1, 1], [], []>} : vector<8x96xbf16>, vector<96x512xbf16>, vector<8x512xf32> -> vector<8x512xf32>
    %36 = arith.addf %31, %35 : vector<8x512xf32>
    %37 = arith.truncf %4 : vector<8x96xf32> to vector<8x96xbf16>
    %c4 = arith.constant 4 : index
    %c0_20 = arith.constant 0 : index
    %c0_21 = arith.constant 0 : index
    %38 = vector.load %arg5[%c4, %c0_20, %c0_21] : memref<12x96x512xbf16, #tpu.memory_space<vmem>>, vector<1x96x512xbf16>
    %39 = vector.shape_cast %38 : vector<1x96x512xbf16> to vector<96x512xbf16>
    %cst_22 = arith.constant dense<0.000000e+00> : vector<8x512xf32>
    %40 = tpu.matmul %37, %39, %cst_22 {dimension_numbers = #tpu.dot_dimension_numbers<[1], [0], [0], [1], [0, 0, 1, 1], [], []>} : vector<8x96xbf16>, vector<96x512xbf16>, vector<8x512xf32> -> vector<8x512xf32>
    %41 = arith.addf %36, %40 : vector<8x512xf32>
    %42 = arith.truncf %6 : vector<8x96xf32> to vector<8x96xbf16>
    %c5 = arith.constant 5 : index
    %c0_23 = arith.constant 0 : index
    %c0_24 = arith.constant 0 : index
    %43 = vector.load %arg5[%c5, %c0_23, %c0_24] : memref<12x96x512xbf16, #tpu.memory_space<vmem>>, vector<1x96x512xbf16>
    %44 = vector.shape_cast %43 : vector<1x96x512xbf16> to vector<96x512xbf16>
    %cst_25 = arith.constant dense<0.000000e+00> : vector<8x512xf32>
    %45 = tpu.matmul %42, %44, %cst_25 {dimension_numbers = #tpu.dot_dimension_numbers<[1], [0], [0], [1], [0, 0, 1, 1], [], []>} : vector<8x96xbf16>, vector<96x512xbf16>, vector<8x512xf32> -> vector<8x512xf32>
    %46 = arith.addf %41, %45 : vector<8x512xf32>
    %47 = arith.truncf %7 : vector<8x96xf32> to vector<8x96xbf16>
    %c6 = arith.constant 6 : index
    %c0_26 = arith.constant 0 : index
    %c0_27 = arith.constant 0 : index
    %48 = vector.load %arg5[%c6, %c0_26, %c0_27] : memref<12x96x512xbf16, #tpu.memory_space<vmem>>, vector<1x96x512xbf16>
    %49 = vector.shape_cast %48 : vector<1x96x512xbf16> to vector<96x512xbf16>
    %cst_28 = arith.constant dense<0.000000e+00> : vector<8x512xf32>
    %50 = tpu.matmul %47, %49, %cst_28 {dimension_numbers = #tpu.dot_dimension_numbers<[1], [0], [0], [1], [0, 0, 1, 1], [], []>} : vector<8x96xbf16>, vector<96x512xbf16>, vector<8x512xf32> -> vector<8x512xf32>
    %51 = arith.addf %46, %50 : vector<8x512xf32>
    %52 = arith.truncf %9 : vector<8x96xf32> to vector<8x96xbf16>
    %c7 = arith.constant 7 : index
    %c0_29 = arith.constant 0 : index
    %c0_30 = arith.constant 0 : index
    %53 = vector.load %arg5[%c7, %c0_29, %c0_30] : memref<12x96x512xbf16, #tpu.memory_space<vmem>>, vector<1x96x512xbf16>
    %54 = vector.shape_cast %53 : vector<1x96x512xbf16> to vector<96x512xbf16>
    %cst_31 = arith.constant dense<0.000000e+00> : vector<8x512xf32>
    %55 = tpu.matmul %52, %54, %cst_31 {dimension_numbers = #tpu.dot_dimension_numbers<[1], [0], [0], [1], [0, 0, 1, 1], [], []>} : vector<8x96xbf16>, vector<96x512xbf16>, vector<8x512xf32> -> vector<8x512xf32>
    %56 = arith.addf %51, %55 : vector<8x512xf32>
    %57 = arith.truncf %10 : vector<8x96xf32> to vector<8x96xbf16>
    %c8 = arith.constant 8 : index
    %c0_32 = arith.constant 0 : index
    %c0_33 = arith.constant 0 : index
    %58 = vector.load %arg5[%c8, %c0_32, %c0_33] : memref<12x96x512xbf16, #tpu.memory_space<vmem>>, vector<1x96x512xbf16>
    %59 = vector.shape_cast %58 : vector<1x96x512xbf16> to vector<96x512xbf16>
    %cst_34 = arith.constant dense<0.000000e+00> : vector<8x512xf32>
    %60 = tpu.matmul %57, %59, %cst_34 {dimension_numbers = #tpu.dot_dimension_numbers<[1], [0], [0], [1], [0, 0, 1, 1], [], []>} : vector<8x96xbf16>, vector<96x512xbf16>, vector<8x512xf32> -> vector<8x512xf32>
    %61 = arith.addf %56, %60 : vector<8x512xf32>
    %62 = arith.truncf %12 : vector<8x96xf32> to vector<8x96xbf16>
    %c9 = arith.constant 9 : index
    %c0_35 = arith.constant 0 : index
    %c0_36 = arith.constant 0 : index
    %63 = vector.load %arg5[%c9, %c0_35, %c0_36] : memref<12x96x512xbf16, #tpu.memory_space<vmem>>, vector<1x96x512xbf16>
    %64 = vector.shape_cast %63 : vector<1x96x512xbf16> to vector<96x512xbf16>
    %cst_37 = arith.constant dense<0.000000e+00> : vector<8x512xf32>
    %65 = tpu.matmul %62, %64, %cst_37 {dimension_numbers = #tpu.dot_dimension_numbers<[1], [0], [0], [1], [0, 0, 1, 1], [], []>} : vector<8x96xbf16>, vector<96x512xbf16>, vector<8x512xf32> -> vector<8x512xf32>
    %66 = arith.addf %61, %65 : vector<8x512xf32>
    %67 = arith.truncf %13 : vector<8x96xf32> to vector<8x96xbf16>
    %c10 = arith.constant 10 : index
    %c0_38 = arith.constant 0 : index
    %c0_39 = arith.constant 0 : index
    %68 = vector.load %arg5[%c10, %c0_38, %c0_39] : memref<12x96x512xbf16, #tpu.memory_space<vmem>>, vector<1x96x512xbf16>
    %69 = vector.shape_cast %68 : vector<1x96x512xbf16> to vector<96x512xbf16>
    %cst_40 = arith.constant dense<0.000000e+00> : vector<8x512xf32>
    %70 = tpu.matmul %67, %69, %cst_40 {dimension_numbers = #tpu.dot_dimension_numbers<[1], [0], [0], [1], [0, 0, 1, 1], [], []>} : vector<8x96xbf16>, vector<96x512xbf16>, vector<8x512xf32> -> vector<8x512xf32>
    %71 = arith.addf %66, %70 : vector<8x512xf32>
    %72 = arith.truncf %15 : vector<8x96xf32> to vector<8x96xbf16>
    %c11 = arith.constant 11 : index
    %c0_41 = arith.constant 0 : index
    %c0_42 = arith.constant 0 : index
    %73 = vector.load %arg5[%c11, %c0_41, %c0_42] : memref<12x96x512xbf16, #tpu.memory_space<vmem>>, vector<1x96x512xbf16>
    %74 = vector.shape_cast %73 : vector<1x96x512xbf16> to vector<96x512xbf16>
    %cst_43 = arith.constant dense<0.000000e+00> : vector<8x512xf32>
    %75 = tpu.matmul %72, %74, %cst_43 {dimension_numbers = #tpu.dot_dimension_numbers<[1], [0], [0], [1], [0, 0, 1, 1], [], []>} : vector<8x96xbf16>, vector<96x512xbf16>, vector<8x512xf32> -> vector<8x512xf32>
    %76 = arith.addf %71, %75 : vector<8x512xf32>
    %c0_44 = arith.constant 0 : index
    %c0_45 = arith.constant 0 : index
    %77 = vector.load %arg6[%c0_44, %c0_45] : memref<1x512xf32, #tpu.memory_space<vmem>>, vector<1x512xf32>
    %78 = vector.broadcast %77 : vector<1x512xf32> to vector<8x512xf32>
    %79 = arith.addf %76, %78 : vector<8x512xf32>
    %80 = arith.negf %79 : vector<8x512xf32>
    %81 = math.exp %80 : vector<8x512xf32>
    %cst_46 = arith.constant 1.000000e+00 : f32
    %82 = vector.broadcast %cst_46 : f32 to vector<8x512xf32>
    %83 = arith.addf %82, %81 : vector<8x512xf32>
    %84 = arith.divf %82, %83 : vector<8x512xf32>
    %85 = arith.truncf %84 : vector<8x512xf32> to vector<8x512xbf16>
    %c0_47 = arith.constant 0 : index
    %c0_48 = arith.constant 0 : index
    %86 = vector.load %arg7[%c0_47, %c0_48] : memref<512x128xbf16, #tpu.memory_space<vmem>>, vector<512x128xbf16>
    %cst_49 = arith.constant dense<0.000000e+00> : vector<8x128xf32>
    %87 = tpu.matmul %85, %86, %cst_49 {dimension_numbers = #tpu.dot_dimension_numbers<[1], [0], [0], [1], [0, 0, 1, 1], [], []>} : vector<8x512xbf16>, vector<512x128xbf16>, vector<8x128xf32> -> vector<8x128xf32>
    %c0_50 = arith.constant 0 : index
    %c0_51 = arith.constant 0 : index
    %88 = vector.load %arg8[%c0_50, %c0_51] : memref<1x128xf32, #tpu.memory_space<vmem>>, vector<1x128xf32>
    %89 = vector.broadcast %88 : vector<1x128xf32> to vector<8x128xf32>
    %90 = arith.addf %87, %89 : vector<8x128xf32>
    %91 = arith.negf %90 : vector<8x128xf32>
    %92 = math.exp %91 : vector<8x128xf32>
    %cst_52 = arith.constant 1.000000e+00 : f32
    %93 = vector.broadcast %cst_52 : f32 to vector<8x128xf32>
    %94 = arith.addf %93, %92 : vector<8x128xf32>
    %95 = arith.divf %93, %94 : vector<8x128xf32>
    %96 = arith.truncf %95 : vector<8x128xf32> to vector<8x128xbf16>
    %c0_53 = arith.constant 0 : index
    %c0_54 = arith.constant 0 : index
    %97 = vector.load %arg9[%c0_53, %c0_54] : memref<128x128xbf16, #tpu.memory_space<vmem>>, vector<128x128xbf16>
    %cst_55 = arith.constant dense<0.000000e+00> : vector<8x128xf32>
    %98 = tpu.matmul %96, %97, %cst_55 {dimension_numbers = #tpu.dot_dimension_numbers<[1], [0], [0], [1], [0, 0, 1, 1], [], []>} : vector<8x128xbf16>, vector<128x128xbf16>, vector<8x128xf32> -> vector<8x128xf32>
    %c0_56 = arith.constant 0 : index
    %c0_57 = arith.constant 0 : index
    %99 = vector.load %arg10[%c0_56, %c0_57] : memref<1x128xf32, #tpu.memory_space<vmem>>, vector<1x128xf32>
    %100 = vector.broadcast %99 : vector<1x128xf32> to vector<8x128xf32>
    %101 = arith.addf %98, %100 : vector<8x128xf32>
    %c0_58 = arith.constant 0 : index
    %c0_59 = arith.constant 0 : index
    %102 = vector.load %arg11[%c0_58, %c0_59] : memref<8x128xf32, #tpu.memory_space<vmem>>, vector<8x128xf32>
    tpu.vector_store %arg11[%c0_58, %c0_59], %101 {strides = array<i32>} : memref<8x128xf32, #tpu.memory_space<vmem>>, vector<8x128xf32>,
    return
  }
  func.func @transform_0(%arg0: i32) -> (i32, i32) {
    %c0_i32 = arith.constant 0 : i32
    %c0_i32_0 = arith.constant 0 : i32
    return %arg0, %c0_i32 : i32, i32
  }
  func.func @transform_1(%arg0: i32) -> (i32, i32) {
    %c0_i32 = arith.constant 0 : i32
    %c0_i32_0 = arith.constant 0 : i32
    return %arg0, %c0_i32 : i32, i32
  }
  func.func @transform_2(%arg0: i32) -> (i32, i32) {
    %c0_i32 = arith.constant 0 : i32
    %c0_i32_0 = arith.constant 0 : i32
    return %arg0, %c0_i32 : i32, i32
  }
  func.func @transform_3(%arg0: i32) -> (i32, i32) {
    %c0_i32 = arith.constant 0 : i32
    %c0_i32_0 = arith.constant 0 : i32
    return %arg0, %c0_i32 : i32, i32
  }
  func.func @transform_4(%arg0: i32) -> (i32, i32, i32) {
    %c0_i32 = arith.constant 0 : i32
    %c0_i32_0 = arith.constant 0 : i32
    %c0_i32_1 = arith.constant 0 : i32
    %c0_i32_2 = arith.constant 0 : i32
    return %c0_i32, %c0_i32_0, %c0_i32_1 : i32, i32, i32
  }
  func.func @transform_5(%arg0: i32) -> (i32, i32) {
    %c0_i32 = arith.constant 0 : i32
    %c0_i32_0 = arith.constant 0 : i32
    %c0_i32_1 = arith.constant 0 : i32
    return %c0_i32, %c0_i32_0 : i32, i32
  }
  func.func @transform_6(%arg0: i32) -> (i32, i32) {
    %c0_i32 = arith.constant 0 : i32
    %c0_i32_0 = arith.constant 0 : i32
    %c0_i32_1 = arith.constant 0 : i32
    return %c0_i32, %c0_i32_0 : i32, i32
  }
  func.func @transform_7(%arg0: i32) -> (i32, i32) {
    %c0_i32 = arith.constant 0 : i32
    %c0_i32_0 = arith.constant 0 : i32
    %c0_i32_1 = arith.constant 0 : i32
    return %c0_i32, %c0_i32_0 : i32, i32
  }
  func.func @transform_8(%arg0: i32) -> (i32, i32) {
    %c0_i32 = arith.constant 0 : i32
    %c0_i32_0 = arith.constant 0 : i32
    %c0_i32_1 = arith.constant 0 : i32
    return %c0_i32, %c0_i32_0 : i32, i32
  }
  func.func @transform_9(%arg0: i32) -> (i32, i32) {
    %c0_i32 = arith.constant 0 : i32
    %c0_i32_0 = arith.constant 0 : i32
    %c0_i32_1 = arith.constant 0 : i32
    return %c0_i32, %c0_i32_0 : i32, i32
  }
  func.func @transform_10(%arg0: i32) -> (i32, i32) {
    %c0_i32 = arith.constant 0 : i32
    %c0_i32_0 = arith.constant 0 : i32
    return %arg0, %c0_i32 : i32, i32
  }
}

</mosaic_0001>

<bundles_post_ra>
// kernel: tpu_custom_call.1
= control target key start
LH: loop header
LB: loop body
LE: loop exit
PB: predicated region body
PF: predicated region fallthrough
CT: control target
= control target key end

     0   :  { %15 = vsyncpa [#allocation3], 0  ;;  %s4949_s0 = inlined_call_operand.hbm [shape: f32[8,96], index: 0, kind: input, shape index: {}]   ;;  %s4950_s1 = inlined_call_operand.hbm [shape: f32[8,96], index: 1, kind: input, shape index: {}]   ;;  %s4951_s2 = inlined_call_operand.hbm [shape: f32[8,96], index: 2, kind: input, shape index: {}]   ;;  %s4952_s3 = inlined_call_operand.hbm [shape: f32[8,96], index: 3, kind: input, shape index: {}]   ;;  %s4953_s4 = inlined_call_operand.hbm [shape: bf16[12,96,512], index: 4, kind: input, shape index: {}]   ;;  %s4954_s5 = inlined_call_operand.hbm [shape: f32[1,512], index: 5, kind: input, shape index: {}]   ;;  %s4955_s6 = inlined_call_operand.hbm [shape: bf16[512,128], index: 6, kind: input, shape index: {}]   ;;  %s4956_s7 = inlined_call_operand.hbm [shape: f32[1,128], index: 7, kind: input, shape index: {}]   ;;  %s4957_s8 = inlined_call_operand.hbm [shape: bf16[128,128], index: 8, kind: input, shape index: {}]   ;;  %s4958_s9 = inlined_call_operand.hbm [shape: f32[1,128], index: 9, kind: input, shape index: {}]   ;;  %s4959_s10 = inlined_call_operand.hbm [shape: f32[8,128], index: 10, kind: output, shape index: {}]  }
   0x1   :  { %16 = vsyncpa [#allocation6], 0 }
   0x2   :  { %17 = vsyncpa [#allocation9], 0 }
   0x3   :  { %18 = vsyncpa [#allocation12], 0 }
   0x4   :  { %19 = vsyncpa [#allocation15], 0 }
   0x5   :  { %20 = vsyncpa [#allocation18], 0 }
   0x6   :  { %21 = vsyncpa [#allocation4], 0  ;;  %s4702_s13 = smov [#allocation5]   ;;  %s4703_s15 = smov [#allocation8]  }
   0x7   :  { %s38_s14 = sshll.u32 %s4702_s13, 4  ;;  %s58_s16 = sshll.u32 %s4703_s15, 4  ;;  %s39_s14 = int_to_ptr.vmem [resolvable:$true] %s38_s14  ;;  %s59_s16 = int_to_ptr.vmem [resolvable:$true] %s58_s16 }
   0x8   :  { %s4476_s17 = scalar_lea.vmem %s39_s14, 128  ;;  %p4481_p1 = scmp.lt.s32.totalorder %s39_s14, %s39_s14 }
   0x9   :  { %p4477_p0 = scmp.ne.s32.totalorder %s39_s14, %s4476_s17  ;;  %p4482_p2 = scmp.lt.s32.totalorder %s4476_s17, %s4476_s17 }
   0xb   :  { %p4483_p3 = por %p4482_p2, %p4481_p1 }
   0xd   :  { %p4484_p4 = pnand %p4483_p3, %p4477_p0 }
   0xf   :  { %4487 = shalt.err (!%p4484_p4)
}
  0x10   :  { %41 = dma.hbm_to_vmem [thread:$0]  %s4950_s1, 128, %s39_s14, [#allocation6]  }
  0x11   :  { %s4496_s20 = scalar_lea.vmem %s59_s16, 128  ;;  %p4501_p6 = scmp.lt.s32.totalorder %s59_s16, %s59_s16 }
  0x12   :  { %p4497_p5 = scmp.ne.s32.totalorder %s59_s16, %s4496_s20  ;;  %p4502_p7 = scmp.lt.s32.totalorder %s4496_s20, %s4496_s20 }
  0x14   :  { %p4503_p8 = por %p4502_p7, %p4501_p6 }
  0x16   :  { %p4504_p9 = pnand %p4503_p8, %p4497_p5 }
  0x18   :  { %4507 = shalt.err (!%p4504_p9)
}
  0x19   :  { %61 = dma.hbm_to_vmem [thread:$0]  %s4952_s3, 128, %s59_s16, [#allocation9]  }
  0x1a   :  { %s4704_s23 = smov [#allocation11]   ;;  %s4705_s25 = smov [#allocation14]  }
  0x1b   :  { %s80_s24 = sshll.u32 %s4704_s23, 4  ;;  %s102_s26 = sshll.u32 %s4705_s25, 4  ;;  %s81_s24 = int_to_ptr.vmem [resolvable:$true] %s80_s24  ;;  %s103_s26 = int_to_ptr.vmem [resolvable:$true] %s102_s26 }
  0x1c   :  { %s4516_s27 = scalar_lea.vmem %s81_s24, 64  ;;  %p4521_p11 = scmp.lt.s32.totalorder %s81_s24, %s81_s24 }
  0x1d   :  { %p4517_p10 = scmp.ne.s32.totalorder %s81_s24, %s4516_s27  ;;  %p4522_p12 = scmp.lt.s32.totalorder %s4516_s27, %s4516_s27 }
  0x1f   :  { %p4523_p13 = por %p4522_p12, %p4521_p11 }
  0x21   :  { %p4524_p0 = pnand %p4523_p13, %p4517_p10 }
  0x23   :  { %4527 = shalt.err (!%p4524_p0)
}
  0x24   :  { %83 = dma.hbm_to_vmem [thread:$0]  %s4954_s5, 64, %s81_s24, [#allocation12]  }
  0x25   :  { %s4536_s29 = scalar_lea.vmem %s103_s26, 16  ;;  %s4540_s3 = scalar_lea.vmem %s103_s26, 32 }
  0x26   :  { %p4537_p1 = scmp.ne.s32.totalorder %s103_s26, %s4536_s29  ;;  %p4541_p2 = scmp.lt.s32.totalorder %s103_s26, %s103_s26 }
  0x27   :  { %p4542_p3 = scmp.lt.s32.totalorder %s4540_s3, %s4536_s29 }
  0x29   :  { %p4543_p4 = por %p4542_p3, %p4541_p2 }
  0x2b   :  { %p4544_p5 = pnand %p4543_p4, %p4537_p1 }
  0x2d   :  { %4547 = shalt.err (!%p4544_p5)
}
  0x2e   :  { %105 = dma.hbm_to_vmem [thread:$0]  %s4956_s7, 16, %s103_s26, [#allocation15]  }
  0x2f   :  { %s4706_s12 = smov [#allocation2]   ;;  %s4707_s14 = smov [#allocation7]  }
  0x30   :  { %s28_s13 = sshll.u32 %s4706_s12, 4  ;;  %s48_s15 = sshll.u32 %s4707_s14, 4  ;;  %s29_s13 = int_to_ptr.vmem [resolvable:$true] %s28_s13  ;;  %s49_s15 = int_to_ptr.vmem [resolvable:$true] %s48_s15 }
  0x31   :  { %s4556_s16 = scalar_lea.vmem %s29_s13, 128  ;;  %p4561_p7 = scmp.lt.s32.totalorder %s29_s13, %s29_s13 }
  0x32   :  { %p4557_p6 = scmp.ne.s32.totalorder %s29_s13, %s4556_s16  ;;  %p4562_p8 = scmp.lt.s32.totalorder %s4556_s16, %s4556_s16 }
  0x34   :  { %p4563_p9 = por %p4562_p8, %p4561_p7 }
  0x36   :  { %p4564_p10 = pnand %p4563_p9, %p4557_p6 }
  0x38   :  { %4567 = shalt.err (!%p4564_p10)
}
  0x39   :  { %31 = dma.hbm_to_vmem [thread:$0]  %s4949_s0, 128, %s29_s13, [#allocation3]  }
  0x3a   :  { %s4576_s18 = scalar_lea.vmem %s49_s15, 128  ;;  %p4581_p12 = scmp.lt.s32.totalorder %s49_s15, %s49_s15 }
  0x3b   :  { %p4577_p11 = scmp.ne.s32.totalorder %s49_s15, %s4576_s18  ;;  %p4582_p13 = scmp.lt.s32.totalorder %s4576_s18, %s4576_s18 }
  0x3d   :  { %p4583_p0 = por %p4582_p13, %p4581_p12 }
  0x3f   :  { %p4584_p1 = pnand %p4583_p0, %p4577_p11 }
  0x41   :  { %4587 = shalt.err (!%p4584_p1)
}
  0x42   :  { %51 = dma.hbm_to_vmem [thread:$0]  %s4951_s2, 128, %s49_s15, [#allocation6]  }
  0x43   :  { %s4708_s20 = smov [#allocation10]  }
  0x44   :  { %s67_s21 = sshll.u32 %s4708_s20, 4  ;;  %s68_s21 = int_to_ptr.vmem [resolvable:$true] %s67_s21 }
  0x45   :  { %s4596_s22 = scalar_lea.vmem %s68_s21, 36864  ;;  %p4601_p3 = scmp.lt.s32.totalorder %s68_s21, %s68_s21 }
  0x46   :  { %p4597_p2 = scmp.ne.s32.totalorder %s68_s21, %s4596_s22  ;;  %p4602_p4 = scmp.lt.s32.totalorder %s4596_s22, %s4596_s22 }
  0x48   :  { %p4603_p5 = por %p4602_p4, %p4601_p3 }
  0x4a   :  { %p4604_p6 = pnand %p4603_p5, %p4597_p2 }
  0x4c   :  { %4607 = shalt.err (!%p4604_p6)
}
  0x4d   :  { %s4709_s0 = smov 256   ;;  %s4710_s23 = smov 16  }
  0x4e   :  { %73 = dma.hbm_to_vmem [thread:$0]  %s4953_s4, 36864, %s68_s21, [#allocation9], %s4709_s0, %s4709_s0, %s4710_s23  }
  0x4f   :  { %s4711_s26 = smov [#allocation13]  }
  0x50   :  { %s89_s27 = sshll.u32 %s4711_s26, 4  ;;  %s90_s27 = int_to_ptr.vmem [resolvable:$true] %s89_s27 }
  0x51   :  { %s4616_s2 = scalar_lea.vmem %s90_s27, 4096  ;;  %p4621_p8 = scmp.lt.s32.totalorder %s90_s27, %s90_s27 }
  0x52   :  { %p4617_p7 = scmp.ne.s32.totalorder %s90_s27, %s4616_s2  ;;  %p4622_p9 = scmp.lt.s32.totalorder %s4616_s2, %s4616_s2 }
  0x54   :  { %p4623_p10 = por %p4622_p9, %p4621_p8 }
  0x56   :  { %p4624_p11 = pnand %p4623_p10, %p4617_p7 }
  0x58   :  { %4627 = shalt.err (!%p4624_p11)
}
  0x59   :  { %s4712_s1 = smov 64   ;;  %s4713_s28 = smov 4  }
  0x5a   :  { %95 = dma.hbm_to_vmem [thread:$0]  %s4955_s6, 4096, %s90_s27, [#allocation12], %s4712_s1, %s4712_s1, %s4713_s28  }
  0x5b   :  { %s4714_s30 = smov [#allocation16]   ;;  %s4715_s12 = smov [#allocation17]  }
  0x5c   :  { %s111_s11 = sshll.u32 %s4714_s30, 4  ;;  %s124_s4 = sshll.u32 %s4715_s12, 4  ;;  %s112_s11 = int_to_ptr.vmem [resolvable:$true] %s111_s11  ;;  %s125_s4 = int_to_ptr.vmem [resolvable:$true] %s124_s4 }
  0x5d   :  { %s4636_s13 = scalar_lea.vmem %s112_s11, 1024  ;;  %p4641_p13 = scmp.lt.s32.totalorder %s112_s11, %s112_s11 }
  0x5e   :  { %p4637_p12 = scmp.ne.s32.totalorder %s112_s11, %s4636_s13  ;;  %p4642_p0 = scmp.lt.s32.totalorder %s4636_s13, %s4636_s13 }
  0x60   :  { %p4643_p1 = por %p4642_p0, %p4641_p13 }
  0x62   :  { %p4644_p2 = pnand %p4643_p1, %p4637_p12 }
  0x64   :  { %4647 = shalt.err (!%p4644_p2)
}
  0x65   :  { %117 = dma.hbm_to_vmem [thread:$0]  %s4957_s8, 1024, %s112_s11, [#allocation15], %s4712_s1, %s4712_s1, %s4713_s28  }
  0x66   :  { %s4656_s16 = scalar_lea.vmem %s125_s4, 16  ;;  %s4660_s6 = scalar_lea.vmem %s125_s4, 32 }
  0x67   :  { %p4657_p3 = scmp.ne.s32.totalorder %s125_s4, %s4656_s16  ;;  %p4661_p4 = scmp.lt.s32.totalorder %s125_s4, %s125_s4 }
  0x68   :  { %p4662_p5 = scmp.lt.s32.totalorder %s4660_s6, %s4656_s16 }
  0x6a   :  { %p4663_p6 = por %p4662_p5, %p4661_p4 }
  0x6c   :  { %p4664_p7 = pnand %p4663_p6, %p4657_p3 }
  0x6e   :  { %4667 = shalt.err (!%p4664_p7)
}
  0x6f   :  { %127 = dma.hbm_to_vmem [thread:$0]  %s4958_s9, 16, %s125_s4, [#allocation18]  }
  0x70   :  { %4688 = dma.done.wait [#allocation3], 128  }
  0x71   :  { %4689 = vsyncadd [#allocation3], 4294967168 }
  0x72   :  { %4690 = dma.done.wait [#allocation6], 256  }
  0x73   :  { %4691 = vsyncadd [#allocation6], 4294967040 }
  0x74   :  { %4692 = dma.done.wait [#allocation9], 36992  }
  0x75   :  { %4693 = vsyncadd [#allocation9], 4294930304 }
  0x76   :  { %4694 = dma.done.wait [#allocation12], 4160  }
  0x77   :  { %4695 = vsyncadd [#allocation12], 4294963136 }
  0x78   :  { %4696 = dma.done.wait [#allocation15], 1040  }
  0x79   :  { %4697 = vsyncadd [#allocation15], 4294966256 }
  0x7a   :  { %4698 = dma.done.wait [#allocation18], 16  }
  0x7b   :  { %4699 = vsyncadd [#allocation18], 4294967280  ;;  %v4716_v0 = vmov 0   ;;  %v3973_v1 = vld [vmem:[#allocation10 + $0x164] ss:$16 sps:$4 sm:$0xff]   ;;  %v4807_v25 = vld [vmem:[#allocation5] sm:$0xff] }
  0x7c   :  { %382 = vmatprep.mubr.bf16.mxu1 %v4716_v0  ;;  %587 = vmatprep.mubr.bf16.mxu0 %v4716_v0  ;;  %v3975_v2 = vld [vmem:[#allocation10 + $0xa4] ss:$16 sps:$4 sm:$0xff]   ;;  %v3977_v3 = vld [vmem:[#allocation10 + $0x160] ss:$16 sps:$4 sm:$0xff]   ;;  %v4011_v27 = vld [vmem:[#allocation10 + $0x16c] ss:$16 sps:$4 sm:$0xff]   ;;  %v4813_v29 = vpack.c.bf16 %v4807_v25, %v4807_v25 }
  0x7d   :  { %354 = vmatprep.subr.bf16.mxu1 %v3973_v1  ;;  %v3978_v4 = vld [vmem:[#allocation10 + $0xa0] ss:$16 sps:$4 sm:$0xff]   ;;  %559 = vmatprep.subr.bf16.mxu0 %v3975_v2  ;;  %v3979_v5 = vld [vmem:[#allocation10 + $0x144] ss:$16 sps:$4 sm:$0xff]   ;;  %vm346_vm0 = vcmask 785408   ;;  %vm4718_vm1 = vmmov 0  }
  0x7e   :  { %355 = vmatpush1.bf16.msra.mxu1 %v3977_v3  ;;  %560 = vmatpush1.bf16.msra.mxu0 %v3978_v4  ;;  %v3981_v6 = vld [vmem:[#allocation10 + $0x84] ss:$16 sps:$4 sm:$0xff]   ;;  %v3983_v7 = vld [vmem:[#allocation10 + $0x140] ss:$16 sps:$4 sm:$0xff]   ;;  %v4009_v31 = vld [vmem:[#allocation10 + $0x168] ss:$16 sps:$4 sm:$0xff]  }
  0x7f   :  { %356 = vmatprep.subr.bf16.mxu1 %v3979_v5  ;;  %v3984_v8 = vld [vmem:[#allocation10 + $0x80] ss:$16 sps:$4 sm:$0xff]   ;;  %561 = vmatprep.subr.bf16.mxu0 %v3981_v6  ;;  %v3985_v9 = vld [vmem:[#allocation10 + $0x124] ss:$16 sps:$4 sm:$0xff]   ;;  %v4017_v33 = vld [vmem:[#allocation10 + $0x14c] ss:$16 sps:$4 sm:$0xff]  }
  0x80   :  { %v3987_v10 = vld [vmem:[#allocation10 + $0x64] ss:$16 sps:$4 sm:$0xff]   ;;  %v3989_v11 = vld [vmem:[#allocation10 + $0x120] ss:$16 sps:$4 sm:$0xff]   ;;  %v4015_v35 = vld [vmem:[#allocation10 + $0x148] ss:$16 sps:$4 sm:$0xff]  }
  0x81   :  { %v3990_v12 = vld [vmem:[#allocation10 + $0x60] ss:$16 sps:$4 sm:$0xff]   ;;  %v3991_v13 = vld [vmem:[#allocation10 + $0x104] ss:$16 sps:$4 sm:$0xff]   ;;  %v4023_v37 = vld [vmem:[#allocation10 + $0x12c] ss:$16 sps:$4 sm:$0xff]  }
  0x82   :  { %357 = vmatpush1.bf16.msra.mxu1 %v3983_v7  ;;  %562 = vmatpush1.bf16.msra.mxu0 %v3984_v8  ;;  %v3993_v14 = vld [vmem:[#allocation10 + $0x44] ss:$16 sps:$4 sm:$0xff]   ;;  %v3995_v15 = vld [vmem:[#allocation10 + $0x100] ss:$16 sps:$4 sm:$0xff]   ;;  %v4021_v39 = vld [vmem:[#allocation10 + $0x128] ss:$16 sps:$4 sm:$0xff]  }
  0x83   :  { %358 = vmatprep.subr.bf16.mxu1 %v3985_v9  ;;  %563 = vmatprep.subr.bf16.mxu0 %v3987_v10  ;;  %v3996_v16 = vld [vmem:[#allocation10 + $0x40] ss:$16 sps:$4 sm:$0xff]   ;;  %v3997_v17 = vld [vmem:[#allocation10 + $0xe4] ss:$16 sps:$4 sm:$0xff]   ;;  %v4029_v41 = vld [vmem:[#allocation10 + $0x10c] ss:$16 sps:$4 sm:$0xff]  }
  0x84   :  { %v3999_v18 = vld [vmem:[#allocation10 + $0x24] ss:$16 sps:$4 sm:$0xff]   ;;  %v4001_v19 = vld [vmem:[#allocation10 + $0xe0] ss:$16 sps:$4 sm:$0xff]   ;;  %v4027_v43 = vld [vmem:[#allocation10 + $0x108] ss:$16 sps:$4 sm:$0xff]  }
  0x85   :  { %v4002_v20 = vld [vmem:[#allocation10 + $0x20] ss:$16 sps:$4 sm:$0xff]   ;;  %v4003_v21 = vld [vmem:[#allocation10 + $0xc4] ss:$16 sps:$4 sm:$0xff]   ;;  %v4035_v45 = vld [vmem:[#allocation10 + $0xec] ss:$16 sps:$4 sm:$0xff]  }
  0x86   :  { %359 = vmatpush1.bf16.msra.mxu1 %v3989_v11  ;;  %564 = vmatpush1.bf16.msra.mxu0 %v3990_v12  ;;  %v4005_v22 = vld [vmem:[#allocation10 + $0x4] ss:$16 sps:$4 sm:$0xff]   ;;  %v4007_v23 = vld [vmem:[#allocation10 + $0xc0] ss:$16 sps:$4 sm:$0xff]   ;;  %v4033_v47 = vld [vmem:[#allocation10 + $0xe8] ss:$16 sps:$4 sm:$0xff]  }
  0x87   :  { %360 = vmatprep.subr.bf16.mxu1 %v3991_v13  ;;  %565 = vmatprep.subr.bf16.mxu0 %v3993_v14  ;;  %v4008_v24 = vld [vmem:[#allocation10] ss:$16 sps:$4 sm:$0xff]   ;;  %v4014_v28 = vld [vmem:[#allocation10 + $0x224] ss:$16 sps:$4 sm:$0xff]   ;;  %v4041_v49 = vld [vmem:[#allocation10 + $0xcc] ss:$16 sps:$4 sm:$0xff]  }
  0x88   :  { %v4809_v26 = vld [vmem:[#allocation2] sm:$0xff]  ;;  %v4039_v51 = vld [vmem:[#allocation10 + $0xc8] ss:$16 sps:$4 sm:$0xff]   ;;  %v4047_v53 = vld [vmem:[#allocation10 + $0xac] ss:$16 sps:$4 sm:$0xff]   ;;  %s4719_s8 = smov [#allocation19]  }
  0x89   :  { %v4817_v30 = vpack.c.bf16 %v4809_v26, %v4809_v26  ;;  %v4012_v32 = vld [vmem:[#allocation10 + $0x220] ss:$16 sps:$4 sm:$0xff]   ;;  %v4020_v34 = vld [vmem:[#allocation10 + $0x204] ss:$16 sps:$4 sm:$0xff]   ;;  %v4045_v56 = vld [vmem:[#allocation10 + $0xa8] ss:$16 sps:$4 sm:$0xff]  }
  0x8a   :  { %361 = vmatpush1.bf16.msra.mxu1 %v3995_v15  ;;  %566 = vmatpush1.bf16.msra.mxu0 %v3996_v16  ;;  %v4018_v36 = vld [vmem:[#allocation10 + $0x200] ss:$16 sps:$4 sm:$0xff]   ;;  %v4026_v38 = vld [vmem:[#allocation10 + $0x1e4] ss:$16 sps:$4 sm:$0xff]   ;;  %v4053_v59 = vld [vmem:[#allocation10 + $0x8c] ss:$16 sps:$4 sm:$0xff]  }
  0x8b   :  { %362 = vmatprep.subr.bf16.mxu1 %v3997_v17  ;;  %567 = vmatprep.subr.bf16.mxu0 %v3999_v18  ;;  %v4024_v40 = vld [vmem:[#allocation10 + $0x1e0] ss:$16 sps:$4 sm:$0xff]   ;;  %v4032_v42 = vld [vmem:[#allocation10 + $0x1c4] ss:$16 sps:$4 sm:$0xff]   ;;  %v4051_v61 = vld [vmem:[#allocation10 + $0x88] ss:$16 sps:$4 sm:$0xff]  }
  0x8c   :  { %v4030_v44 = vld [vmem:[#allocation10 + $0x1c0] ss:$16 sps:$4 sm:$0xff]   ;;  %v4038_v46 = vld [vmem:[#allocation10 + $0x1a4] ss:$16 sps:$4 sm:$0xff]   ;;  %v4059_v63 = vld [vmem:[#allocation10 + $0x6c] ss:$16 sps:$4 sm:$0xff]  }
  0x8d   :  { %v4036_v48 = vld [vmem:[#allocation10 + $0x1a0] ss:$16 sps:$4 sm:$0xff]   ;;  %v4044_v50 = vld [vmem:[#allocation10 + $0x184] ss:$16 sps:$4 sm:$0xff]   ;;  %v4057_v2 = vld [vmem:[#allocation10 + $0x68] ss:$16 sps:$4 sm:$0xff]  }
  0x8e   :  { %363 = vmatpush1.bf16.msra.mxu1 %v4001_v19  ;;  %568 = vmatpush1.bf16.msra.mxu0 %v4002_v20  ;;  %v4042_v52 = vld [vmem:[#allocation10 + $0x180] ss:$16 sps:$4 sm:$0xff]   ;;  %v4050_v55 = vld [vmem:[#allocation10 + $0x2e4] ss:$16 sps:$4 sm:$0xff]   ;;  %v4065_v4 = vld [vmem:[#allocation10 + $0x4c] ss:$16 sps:$4 sm:$0xff]  }
  0x8f   :  { %364 = vmatprep.subr.bf16.mxu1 %v4003_v21  ;;  %569 = vmatprep.subr.bf16.mxu0 %v4005_v22  ;;  %v161_v54 = vld [vmem:[#allocation7] sm:$0xff]  ;;  %v4063_v6 = vld [vmem:[#allocation10 + $0x48] ss:$16 sps:$4 sm:$0xff]   ;;  %v4071_v8 = vld [vmem:[#allocation10 + $0x2c] ss:$16 sps:$4 sm:$0xff]   ;;  %s3509_s9 = sshll.u32 %s4719_s8, 4  ;;  %s3510_s9 = int_to_ptr.vmem [resolvable:$true] %s3509_s9 }
  0x90   :  { %v4825_v57 = vpack.c.bf16 %v161_v54, %v161_v54  ;;  %v4048_v58 = vld [vmem:[#allocation10 + $0x2e0] ss:$16 sps:$4 sm:$0xff]   ;;  %v4056_v60 = vld [vmem:[#allocation10 + $0x2c4] ss:$16 sps:$4 sm:$0xff]   ;;  %v4069_v10 = vld [vmem:[#allocation10 + $0x28] ss:$16 sps:$4 sm:$0xff]   ;;  %p4673_p9 = scmp.lt.s32.totalorder %s3510_s9, %s3510_s9 }
  0x91   :  { %v4054_v62 = vld [vmem:[#allocation10 + $0x2c0] ss:$16 sps:$4 sm:$0xff]   ;;  %v4062_v1 = vld [vmem:[#allocation10 + $0x2a4] ss:$16 sps:$4 sm:$0xff]   ;;  %v4077_v12 = vld [vmem:[#allocation10 + $0xc] ss:$16 sps:$4 sm:$0xff]  }
  0x92   :  { %365 = vmatpush1.bf16.msra.mxu1 %v4007_v23  ;;  %570 = vmatpush1.bf16.msra.mxu0 %v4008_v24  ;;  %v4060_v3 = vld [vmem:[#allocation10 + $0x2a0] ss:$16 sps:$4 sm:$0xff]   ;;  %v4068_v5 = vld [vmem:[#allocation10 + $0x284] ss:$16 sps:$4 sm:$0xff]   ;;  %v4075_v14 = vld [vmem:[#allocation10 + $0x8] ss:$16 sps:$4 sm:$0xff]  }
  0x93   :  { %395 = vmatprep.subr.bf16.mxu1 %v4011_v27  ;;  %790 = vmatprep.subr.bf16.mxu0 %v4014_v28  ;;  %v4066_v7 = vld [vmem:[#allocation10 + $0x280] ss:$16 sps:$4 sm:$0xff]   ;;  %v4074_v9 = vld [vmem:[#allocation10 + $0x264] ss:$16 sps:$4 sm:$0xff]   ;;  %v4083_v16 = vld [vmem:[#allocation10 + $0x22c] ss:$16 sps:$4 sm:$0xff]  }
  0x94   :  { %v4072_v11 = vld [vmem:[#allocation10 + $0x260] ss:$16 sps:$4 sm:$0xff]   ;;  %v4080_v13 = vld [vmem:[#allocation10 + $0x244] ss:$16 sps:$4 sm:$0xff]   ;;  %v4833_v17 = vld [vmem:[#allocation8] sm:$0xff]  ;;  %s4668_s18 = scalar_lea.vmem %s3510_s9, 128 }
  0x95   :  { %3547 = vmatmul.mubr.msk.bf16.vlgmr.msra.gmra.mxu1 %vm346_vm0, %v4813_v29  ;;  %3573 = vmatmul.mubr.msk.bf16.vlgmr.msra.gmra.mxu0 %vm346_vm0, %v4817_v30  ;;  %v4078_v15 = vld [vmem:[#allocation10 + $0x240] ss:$16 sps:$4 sm:$0xff]   ;;  %v4086_v18 = vld [vmem:[#allocation10 + $0x3a4] ss:$16 sps:$4 sm:$0xff]   ;;  %v4081_v19 = vld [vmem:[#allocation10 + $0x228] ss:$16 sps:$4 sm:$0xff]   ;;  %v4837_v20 = vpack.c.bf16 %v4833_v17, %v4833_v17  ;;  %p4669_p8 = scmp.ne.s32.totalorder %s3510_s9, %s4668_s18  ;;  %p4674_p10 = scmp.lt.s32.totalorder %s4668_s18, %s4668_s18 }
  0x96   :  { %396 = vmatpush1.bf16.msra.mxu1 %v4009_v31  ;;  %791 = vmatpush1.bf16.msra.mxu0 %v4012_v32  ;;  %v4084_v21 = vld [vmem:[#allocation10 + $0x3a0] ss:$16 sps:$4 sm:$0xff]   ;;  %v4089_v22 = vld [vmem:[#allocation10 + $0x20c] ss:$16 sps:$4 sm:$0xff]   ;;  %v4092_v23 = vld [vmem:[#allocation10 + $0x384] ss:$16 sps:$4 sm:$0xff]  }
  0x97   :  { %397 = vmatprep.subr.bf16.mxu1 %v4017_v33  ;;  %792 = vmatprep.subr.bf16.mxu0 %v4020_v34  ;;  %v4087_v24 = vld [vmem:[#allocation10 + $0x208] ss:$16 sps:$4 sm:$0xff]   ;;  %v4090_v27 = vld [vmem:[#allocation10 + $0x380] ss:$16 sps:$4 sm:$0xff]   ;;  %v4095_v28 = vld [vmem:[#allocation10 + $0x1ec] ss:$16 sps:$4 sm:$0xff]   ;;  %p4675_p11 = por %p4674_p10, %p4673_p9 }
  0x98   :  { %423 = vmatprep.mubr.bf16.mxu1 %v4716_v0  ;;  %818 = vmatprep.mubr.bf16.mxu0 %v4716_v0  ;;  %v4093_v31 = vld [vmem:[#allocation10 + $0x1e8] ss:$16 sps:$4 sm:$0xff]   ;;  %v4096_v32 = vld [vmem:[#allocation10 + $0x360] ss:$16 sps:$4 sm:$0xff]   ;;  %v4104_v33 = vld [vmem:[#allocation10 + $0x344] ss:$16 sps:$4 sm:$0xff]  }
  0x99   :  { %v4099_v34 = vld [vmem:[#allocation10 + $0x1c8] ss:$16 sps:$4 sm:$0xff]   ;;  %v4131_v54 = vld [vmem:[#allocation10 + $0x2ac] ss:$16 sps:$4 sm:$0xff]   ;;  %p4676_p12 = pnand %p4675_p11, %p4669_p8 }
  0x9a   :  { %398 = vmatpush1.bf16.msra.mxu1 %v4015_v35  ;;  %793 = vmatpush1.bf16.msra.mxu0 %v4018_v36  ;;  %v4102_v35 = vld [vmem:[#allocation10 + $0x340] ss:$16 sps:$4 sm:$0xff]   ;;  %v4107_v36 = vld [vmem:[#allocation10 + $0x1ac] ss:$16 sps:$4 sm:$0xff]  }
  0x9b   :  { %399 = vmatprep.subr.bf16.mxu1 %v4023_v37  ;;  %794 = vmatprep.subr.bf16.mxu0 %v4026_v38  ;;  %v4110_v37 = vld [vmem:[#allocation10 + $0x324] ss:$16 sps:$4 sm:$0xff]   ;;  %v4105_v38 = vld [vmem:[#allocation10 + $0x1a8] ss:$16 sps:$4 sm:$0xff]  }
  0x9e   :  { %400 = vmatpush1.bf16.msra.mxu1 %v4021_v39  ;;  %795 = vmatpush1.bf16.msra.mxu0 %v4024_v40  ;;  %v4108_v39 = vld [vmem:[#allocation10 + $0x320] ss:$16 sps:$4 sm:$0xff]   ;;  %v4113_v40 = vld [vmem:[#allocation10 + $0x18c] ss:$16 sps:$4 sm:$0xff]  }
  0x9f   :  { %401 = vmatprep.subr.bf16.mxu1 %v4029_v41  ;;  %796 = vmatprep.subr.bf16.mxu0 %v4032_v42  ;;  %v4116_v41 = vld [vmem:[#allocation10 + $0x304] ss:$16 sps:$4 sm:$0xff]   ;;  %v4111_v42 = vld [vmem:[#allocation10 + $0x188] ss:$16 sps:$4 sm:$0xff]  }
  0xa2   :  { %402 = vmatpush1.bf16.msra.mxu1 %v4027_v43  ;;  %797 = vmatpush1.bf16.msra.mxu0 %v4030_v44  ;;  %v4114_v43 = vld [vmem:[#allocation10 + $0x300] ss:$16 sps:$4 sm:$0xff]   ;;  %v163_v44 = vmul.f32 %v4807_v25, %v4809_v26 }
  0xa3   :  { %403 = vmatprep.subr.bf16.mxu1 %v4035_v45  ;;  %798 = vmatprep.subr.bf16.mxu0 %v4038_v46  ;;  %v4119_v45 = vld [vmem:[#allocation10 + $0x2ec] ss:$16 sps:$4 sm:$0xff]   ;;  %v4122_v46 = vld [vmem:[#allocation10 + $0x464] ss:$16 sps:$4 sm:$0xff]  }
  0xa6   :  { %404 = vmatpush1.bf16.msra.mxu1 %v4033_v47  ;;  %799 = vmatpush1.bf16.msra.mxu0 %v4036_v48  ;;  %v4117_v47 = vld [vmem:[#allocation10 + $0x2e8] ss:$16 sps:$4 sm:$0xff]   ;;  %v4847_v48 = vpack.c.bf16 %v163_v44, %v163_v44  ;;  %v4198_v44 = vld [vmem:[#allocation10 + $0x5c0] ss:$16 sps:$4 sm:$0xff]  }
  0xa7   :  { %405 = vmatprep.subr.bf16.mxu1 %v4041_v49  ;;  %800 = vmatprep.subr.bf16.mxu0 %v4044_v50  ;;  %v4120_v49 = vld [vmem:[#allocation10 + $0x460] ss:$16 sps:$4 sm:$0xff]   ;;  %v4125_v50 = vld [vmem:[#allocation10 + $0x2cc] ss:$16 sps:$4 sm:$0xff]  }
  0xaa   :  { %406 = vmatpush1.bf16.msra.mxu1 %v4039_v51  ;;  %801 = vmatpush1.bf16.msra.mxu0 %v4042_v52  ;;  %v4128_v51 = vld [vmem:[#allocation10 + $0x444] ss:$16 sps:$4 sm:$0xff]   ;;  %v4123_v52 = vld [vmem:[#allocation10 + $0x2c8] ss:$16 sps:$4 sm:$0xff]  }
  0xab   :  { %600 = vmatprep.subr.bf16.mxu1 %v4047_v53  ;;  %1025 = vmatprep.subr.bf16.mxu0 %v4050_v55  ;;  %v4126_v53 = vld [vmem:[#allocation10 + $0x440] ss:$16 sps:$4 sm:$0xff]   ;;  %v4134_v55 = vld [vmem:[#allocation10 + $0x424] ss:$16 sps:$4 sm:$0xff]  }
  0xad   :  { %3548 = vmatmul.mubr.msk.bf16.vlgmr.msra.gmra.mxu1 %vm346_vm0, %v4813_v29  ;;  %3599 = vmatmul.mubr.msk.bf16.vlgmr.msra.gmra.mxu0 %vm346_vm0, %v4825_v57  ;;  %v4098_v29 = vld [vmem:[#allocation10 + $0x364] ss:$16 sps:$4 sm:$0xff]  }
  0xae   :  { %601 = vmatpush1.bf16.msra.mxu1 %v4045_v56  ;;  %1026 = vmatpush1.bf16.msra.mxu0 %v4048_v58  ;;  %v4129_v56 = vld [vmem:[#allocation10 + $0x2a8] ss:$16 sps:$4 sm:$0xff]   ;;  %v4132_v58 = vld [vmem:[#allocation10 + $0x420] ss:$16 sps:$4 sm:$0xff]  }
  0xaf   :  { %602 = vmatprep.subr.bf16.mxu1 %v4053_v59  ;;  %1027 = vmatprep.subr.bf16.mxu0 %v4056_v60  ;;  %v4140_v59 = vld [vmem:[#allocation10 + $0x404] ss:$16 sps:$4 sm:$0xff]   ;;  %v4135_v60 = vld [vmem:[#allocation10 + $0x288] ss:$16 sps:$4 sm:$0xff]  }
  0xb0   :  { %628 = vmatprep.mubr.bf16.mxu1 %v4716_v0  ;;  %1053 = vmatprep.mubr.bf16.mxu0 %v4716_v0 }
  0xb2   :  { %603 = vmatpush1.bf16.msra.mxu1 %v4051_v61  ;;  %1028 = vmatpush1.bf16.msra.mxu0 %v4054_v62  ;;  %v4138_v61 = vld [vmem:[#allocation10 + $0x400] ss:$16 sps:$4 sm:$0xff]   ;;  %v4143_v62 = vld [vmem:[#allocation10 + $0x26c] ss:$16 sps:$4 sm:$0xff]  }
  0xb3   :  { %604 = vmatprep.subr.bf16.mxu1 %v4059_v63  ;;  %1029 = vmatprep.subr.bf16.mxu0 %v4062_v1  ;;  %v4146_v63 = vld [vmem:[#allocation10 + $0x3e4] ss:$16 sps:$4 sm:$0xff]   ;;  %v164_v1 = vadd.f32 %v4807_v25, %v4809_v26  ;;  %v4156_v25 = vld [vmem:[#allocation10 + $0x520] ss:$16 sps:$4 sm:$0xff]  }
  0xb6   :  { %605 = vmatpush1.bf16.msra.mxu1 %v4057_v2  ;;  %1030 = vmatpush1.bf16.msra.mxu0 %v4060_v3  ;;  %v4141_v2 = vld [vmem:[#allocation10 + $0x268] ss:$16 sps:$4 sm:$0xff]   ;;  %v4144_v3 = vld [vmem:[#allocation10 + $0x3e0] ss:$16 sps:$4 sm:$0xff]  }
  0xb7   :  { %606 = vmatprep.subr.bf16.mxu1 %v4065_v4  ;;  %1031 = vmatprep.subr.bf16.mxu0 %v4068_v5  ;;  %v4149_v4 = vld [vmem:[#allocation10 + $0x24c] ss:$16 sps:$4 sm:$0xff]   ;;  %v4152_v5 = vld [vmem:[#allocation10 + $0x3c4] ss:$16 sps:$4 sm:$0xff]  }
  0xba   :  { %607 = vmatpush1.bf16.msra.mxu1 %v4063_v6  ;;  %1032 = vmatpush1.bf16.msra.mxu0 %v4066_v7  ;;  %v165_v6 = vand.u32 2147483647, %v164_v1  ;;  %v4147_v7 = vld [vmem:[#allocation10 + $0x248] ss:$16 sps:$4 sm:$0xff]   ;;  %v4227_v1 = vld [vmem:[#allocation10 + $0x52c] ss:$16 sps:$4 sm:$0xff]  }
  0xbb   :  { %608 = vmatprep.subr.bf16.mxu1 %v4071_v8  ;;  %1033 = vmatprep.subr.bf16.mxu0 %v4074_v9  ;;  %v4150_v8 = vld [vmem:[#allocation10 + $0x3c0] ss:$16 sps:$4 sm:$0xff]   ;;  %v4155_v9 = vld [vmem:[#allocation10 + $0x3ac] ss:$16 sps:$4 sm:$0xff]  }
  0xbe   :  { %609 = vmatpush1.bf16.msra.mxu1 %v4069_v10  ;;  %1034 = vmatpush1.bf16.msra.mxu0 %v4072_v11  ;;  %v4158_v10 = vld [vmem:[#allocation10 + $0x524] ss:$16 sps:$4 sm:$0xff]   ;;  %v4153_v11 = vld [vmem:[#allocation10 + $0x3a8] ss:$16 sps:$4 sm:$0xff]  }
  0xbf   :  { %610 = vmatprep.subr.bf16.mxu1 %v4077_v12  ;;  %1035 = vmatprep.subr.bf16.mxu0 %v4080_v13  ;;  %v4857_v12 = vpack.c.bf16 %v165_v6, %v165_v6  ;;  %v4161_v13 = vld [vmem:[#allocation10 + $0x38c] ss:$16 sps:$4 sm:$0xff]   ;;  %v4236_v6 = vld [vmem:[#allocation10 + $0x684] ss:$16 sps:$4 sm:$0xff]  }
  0xc2   :  { %611 = vmatpush1.bf16.msra.mxu1 %v4075_v14  ;;  %1036 = vmatpush1.bf16.msra.mxu0 %v4078_v15  ;;  %v4164_v14 = vld [vmem:[#allocation10 + $0x504] ss:$16 sps:$4 sm:$0xff]   ;;  %v4159_v15 = vld [vmem:[#allocation10 + $0x388] ss:$16 sps:$4 sm:$0xff]  }
  0xc3   :  { %831 = vmatprep.subr.bf16.mxu1 %v4083_v16  ;;  %1260 = vmatprep.subr.bf16.mxu0 %v4086_v18  ;;  %v4162_v16 = vld [vmem:[#allocation10 + $0x500] ss:$16 sps:$4 sm:$0xff]   ;;  %v4167_v18 = vld [vmem:[#allocation10 + $0x36c] ss:$16 sps:$4 sm:$0xff]  }
  0xc5   :  { %3574 = vmatmul.mubr.msk.bf16.vlgmr.msra.gmra.mxu1 %vm346_vm0, %v4817_v30  ;;  %3625 = vmatmul.mubr.msk.bf16.vlgmr.msra.gmra.mxu0 %vm346_vm0, %v4837_v20  ;;  %v4101_v30 = vld [vmem:[#allocation10 + $0x1cc] ss:$16 sps:$4 sm:$0xff]  }
  0xc6   :  { %832 = vmatpush1.bf16.msra.mxu1 %v4081_v19  ;;  %1261 = vmatpush1.bf16.msra.mxu0 %v4084_v21  ;;  %v4170_v19 = vld [vmem:[#allocation10 + $0x4e4] ss:$16 sps:$4 sm:$0xff]   ;;  %v4165_v21 = vld [vmem:[#allocation10 + $0x368] ss:$16 sps:$4 sm:$0xff]  }
  0xc7   :  { %833 = vmatprep.subr.bf16.mxu1 %v4089_v22  ;;  %1262 = vmatprep.subr.bf16.mxu0 %v4092_v23  ;;  %v4168_v22 = vld [vmem:[#allocation10 + $0x4e0] ss:$16 sps:$4 sm:$0xff]   ;;  %v4176_v23 = vld [vmem:[#allocation10 + $0x4c4] ss:$16 sps:$4 sm:$0xff]  }
  0xc8   :  { %859 = vmatprep.mubr.bf16.mxu1 %v4716_v0  ;;  %1288 = vmatprep.mubr.bf16.mxu0 %v4716_v0 }
  0xca   :  { %834 = vmatpush1.bf16.msra.mxu1 %v4087_v24  ;;  %1263 = vmatpush1.bf16.msra.mxu0 %v4090_v27  ;;  %v4171_v24 = vld [vmem:[#allocation10 + $0x348] ss:$16 sps:$4 sm:$0xff]   ;;  %v4174_v27 = vld [vmem:[#allocation10 + $0x4c0] ss:$16 sps:$4 sm:$0xff]  }
  0xcb   :  { %835 = vmatprep.subr.bf16.mxu1 %v4095_v28  ;;  %1264 = vmatprep.subr.bf16.mxu0 %v4098_v29  ;;  %v4179_v28 = vld [vmem:[#allocation10 + $0x32c] ss:$16 sps:$4 sm:$0xff]   ;;  %v4182_v29 = vld [vmem:[#allocation10 + $0x4a4] ss:$16 sps:$4 sm:$0xff]  }
  0xce   :  { %836 = vmatpush1.bf16.msra.mxu1 %v4093_v31  ;;  %1265 = vmatpush1.bf16.msra.mxu0 %v4096_v32  ;;  %v4177_v31 = vld [vmem:[#allocation10 + $0x328] ss:$16 sps:$4 sm:$0xff]   ;;  %v4180_v32 = vld [vmem:[#allocation10 + $0x4a0] ss:$16 sps:$4 sm:$0xff]  }
  0xcf   :  { %837 = vmatprep.subr.bf16.mxu1 %v4101_v30  ;;  %1266 = vmatprep.subr.bf16.mxu0 %v4104_v33  ;;  %v4185_v30 = vld [vmem:[#allocation10 + $0x30c] ss:$16 sps:$4 sm:$0xff]   ;;  %v4188_v33 = vld [vmem:[#allocation10 + $0x484] ss:$16 sps:$4 sm:$0xff]  }
  0xd2   :  { %838 = vmatpush1.bf16.msra.mxu1 %v4099_v34  ;;  %1267 = vmatpush1.bf16.msra.mxu0 %v4102_v35  ;;  %v4183_v34 = vld [vmem:[#allocation10 + $0x308] ss:$16 sps:$4 sm:$0xff]   ;;  %v4186_v35 = vld [vmem:[#allocation10 + $0x480] ss:$16 sps:$4 sm:$0xff]  }
  0xd3   :  { %839 = vmatprep.subr.bf16.mxu1 %v4107_v36  ;;  %1268 = vmatprep.subr.bf16.mxu0 %v4110_v37  ;;  %v166_v36 = vmul.f32 %v4833_v17, %v4809_v26  ;;  %v4191_v37 = vld [vmem:[#allocation10 + $0x46c] ss:$16 sps:$4 sm:$0xff]   ;;  %v4195_v26 = vld [vmem:[#allocation10 + $0x448] ss:$16 sps:$4 sm:$0xff]  }
  0xd6   :  { %840 = vmatpush1.bf16.msra.mxu1 %v4105_v38  ;;  %1269 = vmatpush1.bf16.msra.mxu0 %v4108_v39  ;;  %v4194_v38 = vld [vmem:[#allocation10 + $0x5e4] ss:$16 sps:$4 sm:$0xff]   ;;  %v4189_v39 = vld [vmem:[#allocation10 + $0x468] ss:$16 sps:$4 sm:$0xff]  }
  0xd7   :  { %841 = vmatprep.subr.bf16.mxu1 %v4113_v40  ;;  %1270 = vmatprep.subr.bf16.mxu0 %v4116_v41  ;;  %v4867_v40 = vpack.c.bf16 %v166_v36, %v166_v36  ;;  %v4192_v41 = vld [vmem:[#allocation10 + $0x5e0] ss:$16 sps:$4 sm:$0xff]  }
  0xda   :  { %842 = vmatpush1.bf16.msra.mxu1 %v4111_v42  ;;  %1271 = vmatpush1.bf16.msra.mxu0 %v4114_v43  ;;  %v4197_v42 = vld [vmem:[#allocation10 + $0x44c] ss:$16 sps:$4 sm:$0xff]   ;;  %v4200_v43 = vld [vmem:[#allocation10 + $0x5c4] ss:$16 sps:$4 sm:$0xff]  }
  0xdb   :  { %1066 = vmatprep.subr.bf16.mxu1 %v4119_v45  ;;  %1495 = vmatprep.subr.bf16.mxu0 %v4122_v46  ;;  %v4203_v45 = vld [vmem:[#allocation10 + $0x42c] ss:$16 sps:$4 sm:$0xff]   ;;  %v4206_v46 = vld [vmem:[#allocation10 + $0x5a4] ss:$16 sps:$4 sm:$0xff]  }
  0xdd   :  { %3600 = vmatmul.mubr.msk.bf16.vlgmr.msra.gmra.mxu1 %vm346_vm0, %v4825_v57  ;;  %3651 = vmatmul.mubr.msk.bf16.vlgmr.msra.gmra.mxu0 %vm346_vm0, %v4847_v48  ;;  %v4137_v57 = vld [vmem:[#allocation10 + $0x28c] ss:$16 sps:$4 sm:$0xff]  }
  0xde   :  { %1067 = vmatpush1.bf16.msra.mxu1 %v4117_v47  ;;  %1496 = vmatpush1.bf16.msra.mxu0 %v4120_v49  ;;  %v4201_v47 = vld [vmem:[#allocation10 + $0x428] ss:$16 sps:$4 sm:$0xff]   ;;  %v4204_v49 = vld [vmem:[#allocation10 + $0x5a0] ss:$16 sps:$4 sm:$0xff]  }
  0xdf   :  { %1068 = vmatprep.subr.bf16.mxu1 %v4125_v50  ;;  %1497 = vmatprep.subr.bf16.mxu0 %v4128_v51  ;;  %v4212_v50 = vld [vmem:[#allocation10 + $0x584] ss:$16 sps:$4 sm:$0xff]   ;;  %v4207_v51 = vld [vmem:[#allocation10 + $0x408] ss:$16 sps:$4 sm:$0xff]  }
  0xe0   :  { %1094 = vmatprep.mubr.bf16.mxu1 %v4716_v0  ;;  %1523 = vmatprep.mubr.bf16.mxu0 %v4716_v0 }
  0xe2   :  { %1069 = vmatpush1.bf16.msra.mxu1 %v4123_v52  ;;  %1498 = vmatpush1.bf16.msra.mxu0 %v4126_v53  ;;  %v4210_v52 = vld [vmem:[#allocation10 + $0x580] ss:$16 sps:$4 sm:$0xff]   ;;  %v4215_v53 = vld [vmem:[#allocation10 + $0x3ec] ss:$16 sps:$4 sm:$0xff]  }
  0xe3   :  { %1070 = vmatprep.subr.bf16.mxu1 %v4131_v54  ;;  %1499 = vmatprep.subr.bf16.mxu0 %v4134_v55  ;;  %v4218_v54 = vld [vmem:[#allocation10 + $0x564] ss:$16 sps:$4 sm:$0xff]  }
  0xe4   :  { %v4875_v55 = vld [vmem:[#allocation2] sm:$0xff] }
  0xe6   :  { %1071 = vmatpush1.bf16.msra.mxu1 %v4129_v56  ;;  %1500 = vmatpush1.bf16.msra.mxu0 %v4132_v58  ;;  %v167_v56 = vadd.f32 %v4875_v55, %v4833_v17  ;;  %v4213_v58 = vld [vmem:[#allocation10 + $0x3e8] ss:$16 sps:$4 sm:$0xff]   ;;  %v4228_v17 = vld [vmem:[#allocation10 + $0x6a0] ss:$16 sps:$4 sm:$0xff]  }
  0xe7   :  { %1072 = vmatprep.subr.bf16.mxu1 %v4137_v57  ;;  %1501 = vmatprep.subr.bf16.mxu0 %v4140_v59  ;;  %v4216_v57 = vld [vmem:[#allocation10 + $0x560] ss:$16 sps:$4 sm:$0xff]   ;;  %v4221_v59 = vld [vmem:[#allocation10 + $0x3cc] ss:$16 sps:$4 sm:$0xff]  }
  0xea   :  { %1073 = vmatpush1.bf16.msra.mxu1 %v4135_v60  ;;  %1502 = vmatpush1.bf16.msra.mxu0 %v4138_v61  ;;  %v4224_v60 = vld [vmem:[#allocation10 + $0x544] ss:$16 sps:$4 sm:$0xff]   ;;  %v168_v61 = vand.u32 2147483647, %v167_v56 }
  0xeb   :  { %1074 = vmatprep.subr.bf16.mxu1 %v4143_v62  ;;  %1503 = vmatprep.subr.bf16.mxu0 %v4146_v63  ;;  %v4219_v62 = vld [vmem:[#allocation10 + $0x3c8] ss:$16 sps:$4 sm:$0xff]   ;;  %v4222_v63 = vld [vmem:[#allocation10 + $0x540] ss:$16 sps:$4 sm:$0xff]   ;;  %v4302_v56 = vld [vmem:[#allocation10 + $0x824] ss:$16 sps:$4 sm:$0xff]  }
  0xee   :  { %1075 = vmatpush1.bf16.msra.mxu1 %v4141_v2  ;;  %1504 = vmatpush1.bf16.msra.mxu0 %v4144_v3  ;;  %v4230_v2 = vld [vmem:[#allocation10 + $0x6a4] ss:$16 sps:$4 sm:$0xff]   ;;  %v4225_v3 = vld [vmem:[#allocation10 + $0x528] ss:$16 sps:$4 sm:$0xff]  }
  0xef   :  { %1076 = vmatprep.subr.bf16.mxu1 %v4149_v4  ;;  %1505 = vmatprep.subr.bf16.mxu0 %v4152_v5  ;;  %v4879_v4 = vpack.c.bf16 %v168_v61, %v168_v61  ;;  %v4233_v5 = vld [vmem:[#allocation10 + $0x50c] ss:$16 sps:$4 sm:$0xff]   ;;  %v4308_v61 = vld [vmem:[#allocation10 + $0x804] ss:$16 sps:$4 sm:$0xff]  }
  0xf2   :  { %1077 = vmatpush1.bf16.msra.mxu1 %v4147_v7  ;;  %1506 = vmatpush1.bf16.msra.mxu0 %v4150_v8  ;;  %v4231_v7 = vld [vmem:[#allocation10 + $0x508] ss:$16 sps:$4 sm:$0xff]   ;;  %v4234_v8 = vld [vmem:[#allocation10 + $0x680] ss:$16 sps:$4 sm:$0xff]  }
  0xf3   :  { %1301 = vmatprep.subr.bf16.mxu1 %v4155_v9  ;;  %1730 = vmatprep.subr.bf16.mxu0 %v4158_v10  ;;  %v4239_v9 = vld [vmem:[#allocation10 + $0x4ec] ss:$16 sps:$4 sm:$0xff]   ;;  %v4242_v10 = vld [vmem:[#allocation10 + $0x664] ss:$16 sps:$4 sm:$0xff]  }
  0xf5   :  { %3626 = vmatmul.mubr.msk.bf16.vlgmr.msra.gmra.mxu1 %vm346_vm0, %v4837_v20  ;;  %3677 = vmatmul.mubr.msk.bf16.vlgmr.msra.gmra.mxu0 %vm346_vm0, %v4857_v12  ;;  %v4173_v20 = vld [vmem:[#allocation10 + $0x34c] ss:$16 sps:$4 sm:$0xff]  }
  0xf6   :  { %1302 = vmatpush1.bf16.msra.mxu1 %v4153_v11  ;;  %1731 = vmatpush1.bf16.msra.mxu0 %v4156_v25  ;;  %v4237_v11 = vld [vmem:[#allocation10 + $0x4e8] ss:$16 sps:$4 sm:$0xff]   ;;  %v4240_v25 = vld [vmem:[#allocation10 + $0x660] ss:$16 sps:$4 sm:$0xff]  }
  0xf7   :  { %1303 = vmatprep.subr.bf16.mxu1 %v4161_v13  ;;  %1732 = vmatprep.subr.bf16.mxu0 %v4164_v14  ;;  %v4248_v13 = vld [vmem:[#allocation10 + $0x644] ss:$16 sps:$4 sm:$0xff]   ;;  %v4243_v14 = vld [vmem:[#allocation10 + $0x4c8] ss:$16 sps:$4 sm:$0xff]  }
  0xf8   :  { %1329 = vmatprep.mubr.bf16.mxu1 %v4716_v0  ;;  %1758 = vmatprep.mubr.bf16.mxu0 %v4716_v0 }
  0xfa   :  { %1304 = vmatpush1.bf16.msra.mxu1 %v4159_v15  ;;  %1733 = vmatpush1.bf16.msra.mxu0 %v4162_v16  ;;  %v4246_v15 = vld [vmem:[#allocation10 + $0x640] ss:$16 sps:$4 sm:$0xff]   ;;  %v4251_v16 = vld [vmem:[#allocation10 + $0x4ac] ss:$16 sps:$4 sm:$0xff]  }
  0xfb   :  { %1305 = vmatprep.subr.bf16.mxu1 %v4167_v18  ;;  %1734 = vmatprep.subr.bf16.mxu0 %v4170_v19  ;;  %v4254_v18 = vld [vmem:[#allocation10 + $0x624] ss:$16 sps:$4 sm:$0xff]   ;;  %v4249_v19 = vld [vmem:[#allocation10 + $0x4a8] ss:$16 sps:$4 sm:$0xff]  }
  0xfe   :  { %1306 = vmatpush1.bf16.msra.mxu1 %v4165_v21  ;;  %1735 = vmatpush1.bf16.msra.mxu0 %v4168_v22  ;;  %v4252_v21 = vld [vmem:[#allocation10 + $0x620] ss:$16 sps:$4 sm:$0xff]   ;;  %v4257_v22 = vld [vmem:[#allocation10 + $0x48c] ss:$16 sps:$4 sm:$0xff]  }
  0xff   :  { %1307 = vmatprep.subr.bf16.mxu1 %v4173_v20  ;;  %1736 = vmatprep.subr.bf16.mxu0 %v4176_v23  ;;  %v4260_v20 = vld [vmem:[#allocation10 + $0x604] ss:$16 sps:$4 sm:$0xff]   ;;  %v4255_v23 = vld [vmem:[#allocation10 + $0x488] ss:$16 sps:$4 sm:$0xff]  }
 0x102   :  { %1308 = vmatpush1.bf16.msra.mxu1 %v4171_v24  ;;  %1737 = vmatpush1.bf16.msra.mxu0 %v4174_v27  ;;  %v4258_v24 = vld [vmem:[#allocation10 + $0x600] ss:$16 sps:$4 sm:$0xff]  }
 0x103   :  { %1309 = vmatprep.subr.bf16.mxu1 %v4179_v28  ;;  %1738 = vmatprep.subr.bf16.mxu0 %v4182_v29  ;;  %v4887_v27 = vld [vmem:[#allocation7] sm:$0xff]  ;;  %v4263_v29 = vld [vmem:[#allocation10 + $0x5ec] ss:$16 sps:$4 sm:$0xff]  }
 0x104   :  { %v169_v28 = vmul.f32 %v4887_v27, %v4875_v55 }
 0x106   :  { %1310 = vmatpush1.bf16.msra.mxu1 %v4177_v31  ;;  %1739 = vmatpush1.bf16.msra.mxu0 %v4180_v32  ;;  %v170_v31 = vadd.f32 %v4887_v27, %v4875_v55  ;;  %v4266_v32 = vld [vmem:[#allocation10 + $0x764] ss:$16 sps:$4 sm:$0xff]   ;;  %v4299_v55 = vld [vmem:[#allocation10 + $0x6ac] ss:$16 sps:$4 sm:$0xff]  }
 0x107   :  { %1311 = vmatprep.subr.bf16.mxu1 %v4185_v30  ;;  %1740 = vmatprep.subr.bf16.mxu0 %v4188_v33  ;;  %v4261_v30 = vld [vmem:[#allocation10 + $0x5e8] ss:$16 sps:$4 sm:$0xff]   ;;  %v4893_v33 = vpack.c.bf16 %v169_v28, %v169_v28 }
 0x108   :  { %v171_v36 = vand.u32 2147483647, %v170_v31  ;;  %v4330_v31 = vld [vmem:[#allocation10 + $0x780] ss:$16 sps:$4 sm:$0xff]  }
 0x10a   :  { %1312 = vmatpush1.bf16.msra.mxu1 %v4183_v34  ;;  %1741 = vmatpush1.bf16.msra.mxu0 %v4186_v35  ;;  %v4264_v34 = vld [vmem:[#allocation10 + $0x760] ss:$16 sps:$4 sm:$0xff]   ;;  %v4269_v35 = vld [vmem:[#allocation10 + $0x5cc] ss:$16 sps:$4 sm:$0xff]  }
 0x10b   :  { %1536 = vmatprep.subr.bf16.mxu1 %v4191_v37  ;;  %1965 = vmatprep.subr.bf16.mxu0 %v4194_v38  ;;  %v4272_v37 = vld [vmem:[#allocation10 + $0x744] ss:$16 sps:$4 sm:$0xff]   ;;  %v4267_v38 = vld [vmem:[#allocation10 + $0x5c8] ss:$16 sps:$4 sm:$0xff]  }
 0x10d   :  { %3652 = vmatmul.mubr.msk.bf16.vlgmr.msra.gmra.mxu1 %vm346_vm0, %v4847_v48  ;;  %3703 = vmatmul.mubr.msk.bf16.vlgmr.msra.gmra.mxu0 %vm346_vm0, %v4867_v40  ;;  %v4209_v48 = vld [vmem:[#allocation10 + $0x40c] ss:$16 sps:$4 sm:$0xff]  }
 0x10e   :  { %1537 = vmatpush1.bf16.msra.mxu1 %v4189_v39  ;;  %1966 = vmatpush1.bf16.msra.mxu0 %v4192_v41  ;;  %v4270_v39 = vld [vmem:[#allocation10 + $0x740] ss:$16 sps:$4 sm:$0xff]   ;;  %v4275_v41 = vld [vmem:[#allocation10 + $0x5ac] ss:$16 sps:$4 sm:$0xff]  }
 0x10f   :  { %1538 = vmatprep.subr.bf16.mxu1 %v4197_v42  ;;  %1967 = vmatprep.subr.bf16.mxu0 %v4200_v43  ;;  %v4278_v42 = vld [vmem:[#allocation10 + $0x724] ss:$16 sps:$4 sm:$0xff]   ;;  %v4273_v43 = vld [vmem:[#allocation10 + $0x5a8] ss:$16 sps:$4 sm:$0xff]  }
 0x110   :  { %1564 = vmatprep.mubr.bf16.mxu1 %v4716_v0  ;;  %1993 = vmatprep.mubr.bf16.mxu0 %v4716_v0 }
 0x112   :  { %1539 = vmatpush1.bf16.msra.mxu1 %v4195_v26  ;;  %1968 = vmatpush1.bf16.msra.mxu0 %v4198_v44  ;;  %v4276_v26 = vld [vmem:[#allocation10 + $0x720] ss:$16 sps:$4 sm:$0xff]   ;;  %v4281_v44 = vld [vmem:[#allocation10 + $0x58c] ss:$16 sps:$4 sm:$0xff]  }
 0x113   :  { %1540 = vmatprep.subr.bf16.mxu1 %v4203_v45  ;;  %1969 = vmatprep.subr.bf16.mxu0 %v4206_v46  ;;  %v4284_v45 = vld [vmem:[#allocation10 + $0x704] ss:$16 sps:$4 sm:$0xff]   ;;  %v4282_v46 = vld [vmem:[#allocation10 + $0x700] ss:$16 sps:$4 sm:$0xff]  }
 0x116   :  { %1541 = vmatpush1.bf16.msra.mxu1 %v4201_v47  ;;  %1970 = vmatpush1.bf16.msra.mxu0 %v4204_v49  ;;  %v4287_v47 = vld [vmem:[#allocation10 + $0x56c] ss:$16 sps:$4 sm:$0xff]   ;;  %v4290_v49 = vld [vmem:[#allocation10 + $0x6e4] ss:$16 sps:$4 sm:$0xff]  }
 0x117   :  { %1542 = vmatprep.subr.bf16.mxu1 %v4209_v48  ;;  %1971 = vmatprep.subr.bf16.mxu0 %v4212_v50  ;;  %v4285_v48 = vld [vmem:[#allocation10 + $0x568] ss:$16 sps:$4 sm:$0xff]   ;;  %v4288_v50 = vld [vmem:[#allocation10 + $0x6e0] ss:$16 sps:$4 sm:$0xff]  }
 0x11a   :  { %1543 = vmatpush1.bf16.msra.mxu1 %v4207_v51  ;;  %1972 = vmatpush1.bf16.msra.mxu0 %v4210_v52  ;;  %v4293_v51 = vld [vmem:[#allocation10 + $0x54c] ss:$16 sps:$4 sm:$0xff]   ;;  %v4296_v52 = vld [vmem:[#allocation10 + $0x6c4] ss:$16 sps:$4 sm:$0xff]  }
 0x11b   :  { %1544 = vmatprep.subr.bf16.mxu1 %v4215_v53  ;;  %1973 = vmatprep.subr.bf16.mxu0 %v4218_v54  ;;  %v4291_v53 = vld [vmem:[#allocation10 + $0x548] ss:$16 sps:$4 sm:$0xff]   ;;  %v4294_v54 = vld [vmem:[#allocation10 + $0x6c0] ss:$16 sps:$4 sm:$0xff]  }
 0x11e   :  { %1545 = vmatpush1.bf16.msra.mxu1 %v4213_v58  ;;  %1974 = vmatpush1.bf16.msra.mxu0 %v4216_v57  ;;  %v4297_v58 = vld [vmem:[#allocation10 + $0x6a8] ss:$16 sps:$4 sm:$0xff]   ;;  %v4300_v57 = vld [vmem:[#allocation10 + $0x820] ss:$16 sps:$4 sm:$0xff]  }
 0x11f   :  { %1546 = vmatprep.subr.bf16.mxu1 %v4221_v59  ;;  %1975 = vmatprep.subr.bf16.mxu0 %v4224_v60  ;;  %v4901_v59 = vpack.c.bf16 %v171_v36, %v171_v36  ;;  %v4305_v60 = vld [vmem:[#allocation10 + $0x68c] ss:$16 sps:$4 sm:$0xff]   ;;  %v4336_v36 = vld [vmem:[#allocation10 + $0x8e0] ss:$16 sps:$4 sm:$0xff]  }
 0x122   :  { %1547 = vmatpush1.bf16.msra.mxu1 %v4219_v62  ;;  %1976 = vmatpush1.bf16.msra.mxu0 %v4222_v63 }
 0x123   :  { %1771 = vmatprep.subr.bf16.mxu1 %v4227_v1  ;;  %2200 = vmatprep.subr.bf16.mxu0 %v4230_v2  ;;  %v4303_v2 = vld [vmem:[#allocation10 + $0x688] ss:$16 sps:$4 sm:$0xff]  }
 0x125   :  { %3678 = vmatmul.mubr.msk.bf16.vlgmr.msra.gmra.mxu1 %vm346_vm0, %v4857_v12  ;;  %3729 = vmatmul.mubr.msk.bf16.vlgmr.msra.gmra.mxu0 %vm346_vm0, %v4879_v4  ;;  %v4245_v12 = vld [vmem:[#allocation10 + $0x4cc] ss:$16 sps:$4 sm:$0xff]  }
 0x126   :  { %1772 = vmatpush1.bf16.msra.mxu1 %v4225_v3  ;;  %2201 = vmatpush1.bf16.msra.mxu0 %v4228_v17  ;;  %v4306_v3 = vld [vmem:[#allocation10 + $0x800] ss:$16 sps:$4 sm:$0xff]  }
 0x127   :  { %1773 = vmatprep.subr.bf16.mxu1 %v4233_v5  ;;  %2202 = vmatprep.subr.bf16.mxu0 %v4236_v6  ;;  %v4311_v6 = vld [vmem:[#allocation10 + $0x66c] ss:$16 sps:$4 sm:$0xff]  }
 0x128   :  { %1799 = vmatprep.mubr.bf16.mxu1 %v4716_v0  ;;  %2228 = vmatprep.mubr.bf16.mxu0 %v4716_v0 }
 0x12a   :  { %1774 = vmatpush1.bf16.msra.mxu1 %v4231_v7  ;;  %2203 = vmatpush1.bf16.msra.mxu0 %v4234_v8  ;;  %v4314_v7 = vld [vmem:[#allocation10 + $0x7e4] ss:$16 sps:$4 sm:$0xff]  }
 0x12b   :  { %1775 = vmatprep.subr.bf16.mxu1 %v4239_v9  ;;  %2204 = vmatprep.subr.bf16.mxu0 %v4242_v10  ;;  %v4309_v10 = vld [vmem:[#allocation10 + $0x668] ss:$16 sps:$4 sm:$0xff]  }
 0x12e   :  { %1776 = vmatpush1.bf16.msra.mxu1 %v4237_v11  ;;  %2205 = vmatpush1.bf16.msra.mxu0 %v4240_v25  ;;  %v4312_v11 = vld [vmem:[#allocation10 + $0x7e0] ss:$16 sps:$4 sm:$0xff]  }
 0x12f   :  { %1777 = vmatprep.subr.bf16.mxu1 %v4245_v12  ;;  %2206 = vmatprep.subr.bf16.mxu0 %v4248_v13  ;;  %v4317_v12 = vld [vmem:[#allocation10 + $0x64c] ss:$16 sps:$4 sm:$0xff]   ;;  %v4320_v13 = vld [vmem:[#allocation10 + $0x7c4] ss:$16 sps:$4 sm:$0xff]  }
 0x132   :  { %1778 = vmatpush1.bf16.msra.mxu1 %v4243_v14  ;;  %2207 = vmatpush1.bf16.msra.mxu0 %v4246_v15  ;;  %v4315_v15 = vld [vmem:[#allocation10 + $0x648] ss:$16 sps:$4 sm:$0xff]  }
 0x133   :  { %1779 = vmatprep.subr.bf16.mxu1 %v4251_v16  ;;  %2208 = vmatprep.subr.bf16.mxu0 %v4254_v18  ;;  %v4318_v16 = vld [vmem:[#allocation10 + $0x7c0] ss:$16 sps:$4 sm:$0xff]   ;;  %v4323_v18 = vld [vmem:[#allocation10 + $0x62c] ss:$16 sps:$4 sm:$0xff]  }
 0x136   :  { %1780 = vmatpush1.bf16.msra.mxu1 %v4249_v19  ;;  %2209 = vmatpush1.bf16.msra.mxu0 %v4252_v21  ;;  %v4326_v19 = vld [vmem:[#allocation10 + $0x7a4] ss:$16 sps:$4 sm:$0xff]   ;;  %v4321_v21 = vld [vmem:[#allocation10 + $0x628] ss:$16 sps:$4 sm:$0xff]  }
 0x137   :  { %1781 = vmatprep.subr.bf16.mxu1 %v4257_v22  ;;  %2210 = vmatprep.subr.bf16.mxu0 %v4260_v20  ;;  %v4324_v22 = vld [vmem:[#allocation10 + $0x7a0] ss:$16 sps:$4 sm:$0xff]   ;;  %v4329_v20 = vld [vmem:[#allocation10 + $0x60c] ss:$16 sps:$4 sm:$0xff]  }
 0x13a   :  { %1782 = vmatpush1.bf16.msra.mxu1 %v4255_v23  ;;  %2211 = vmatpush1.bf16.msra.mxu0 %v4258_v24  ;;  %v4332_v23 = vld [vmem:[#allocation10 + $0x784] ss:$16 sps:$4 sm:$0xff]   ;;  %v4467_v24 = vld [vmem:[#allocation5] sm:$0xff] }
 0x13b   :  { %2006 = vmatprep.subr.bf16.mxu1 %v4263_v29  ;;  %2435 = vmatprep.subr.bf16.mxu0 %v4266_v32  ;;  %v172_v28 = vmul.f32 %v4467_v24, %v4887_v27  ;;  %v4327_v29 = vld [vmem:[#allocation10 + $0x608] ss:$16 sps:$4 sm:$0xff]   ;;  %v4335_v32 = vld [vmem:[#allocation10 + $0x76c] ss:$16 sps:$4 sm:$0xff]  }
 0x13d   :  { %3704 = vmatmul.mubr.msk.bf16.vlgmr.msra.gmra.mxu1 %vm346_vm0, %v4867_v40  ;;  %3755 = vmatmul.mubr.msk.bf16.vlgmr.msra.gmra.mxu0 %vm346_vm0, %v4893_v33  ;;  %v4279_v40 = vld [vmem:[#allocation10 + $0x588] ss:$16 sps:$4 sm:$0xff]  }
 0x13e   :  { %2007 = vmatpush1.bf16.msra.mxu1 %v4261_v30  ;;  %2436 = vmatpush1.bf16.msra.mxu0 %v4264_v34  ;;  %v4338_v30 = vld [vmem:[#allocation10 + $0x8e4] ss:$16 sps:$4 sm:$0xff]   ;;  %v4914_v34 = vpack.c.bf16 %v172_v28, %v172_v28  ;;  %v4386_v28 = vld [vmem:[#allocation10 + $0x78c] ss:$16 sps:$4 sm:$0xff]  }
 0x13f   :  { %2008 = vmatprep.subr.bf16.mxu1 %v4269_v35  ;;  %2437 = vmatprep.subr.bf16.mxu0 %v4272_v37  ;;  %v4333_v35 = vld [vmem:[#allocation10 + $0x768] ss:$16 sps:$4 sm:$0xff]   ;;  %v4341_v37 = vld [vmem:[#allocation10 + $0x74c] ss:$16 sps:$4 sm:$0xff]  }
 0x140   :  { %2034 = vmatprep.mubr.bf16.mxu1 %v4716_v0  ;;  %2463 = vmatprep.mubr.bf16.mxu0 %v4716_v0 }
 0x142   :  { %2009 = vmatpush1.bf16.msra.mxu1 %v4267_v38  ;;  %2438 = vmatpush1.bf16.msra.mxu0 %v4270_v39  ;;  %v4344_v38 = vld [vmem:[#allocation10 + $0x8c4] ss:$16 sps:$4 sm:$0xff]  }
 0x143   :  { %2010 = vmatprep.subr.bf16.mxu1 %v4275_v41  ;;  %2439 = vmatprep.subr.bf16.mxu0 %v4278_v42 }
 0x146   :  { %2011 = vmatpush1.bf16.msra.mxu1 %v4273_v43  ;;  %2440 = vmatpush1.bf16.msra.mxu0 %v4276_v26  ;;  %v4339_v43 = vld [vmem:[#allocation10 + $0x748] ss:$16 sps:$4 sm:$0xff]   ;;  %v4342_v26 = vld [vmem:[#allocation10 + $0x8c0] ss:$16 sps:$4 sm:$0xff]  }
 0x147   :  { %2012 = vmatprep.subr.bf16.mxu1 %v4281_v44  ;;  %2441 = vmatprep.subr.bf16.mxu0 %v4284_v45 }
 0x14a   :  { %2013 = vmatpush1.bf16.msra.mxu1 %v4279_v40  ;;  %2442 = vmatpush1.bf16.msra.mxu0 %v4282_v46  ;;  %v4347_v40 = vld [vmem:[#allocation10 + $0x72c] ss:$16 sps:$4 sm:$0xff]   ;;  %v4350_v46 = vld [vmem:[#allocation10 + $0x8a4] ss:$16 sps:$4 sm:$0xff]  }
 0x14b   :  { %2014 = vmatprep.subr.bf16.mxu1 %v4287_v47  ;;  %2443 = vmatprep.subr.bf16.mxu0 %v4290_v49 }
 0x14e   :  { %2015 = vmatpush1.bf16.msra.mxu1 %v4285_v48  ;;  %2444 = vmatpush1.bf16.msra.mxu0 %v4288_v50  ;;  %v4345_v48 = vld [vmem:[#allocation10 + $0x728] ss:$16 sps:$4 sm:$0xff]   ;;  %v4348_v50 = vld [vmem:[#allocation10 + $0x8a0] ss:$16 sps:$4 sm:$0xff]  }
 0x14f   :  { %2016 = vmatprep.subr.bf16.mxu1 %v4293_v51  ;;  %2445 = vmatprep.subr.bf16.mxu0 %v4296_v52  ;;  %v4353_v52 = vld [vmem:[#allocation10 + $0x70c] ss:$16 sps:$4 sm:$0xff]  }
 0x152   :  { %2017 = vmatpush1.bf16.msra.mxu1 %v4291_v53  ;;  %2446 = vmatpush1.bf16.msra.mxu0 %v4294_v54  ;;  %v4356_v53 = vld [vmem:[#allocation10 + $0x884] ss:$16 sps:$4 sm:$0xff]  }
 0x153   :  { %2241 = vmatprep.subr.bf16.mxu1 %v4299_v55  ;;  %2670 = vmatprep.subr.bf16.mxu0 %v4302_v56  ;;  %v4351_v55 = vld [vmem:[#allocation10 + $0x708] ss:$16 sps:$4 sm:$0xff]   ;;  %v4354_v56 = vld [vmem:[#allocation10 + $0x880] ss:$16 sps:$4 sm:$0xff]  }
 0x155   :  { %v384_v62 = vpop.f32.mrf.mxu1  ;;  %v589_v63 = vpop.f32.mrf.mxu0  ;;  %3730 = vmatmul.mubr.msk.bf16.vlgmr.msra.gmra.mxu1 %vm346_vm0, %v4879_v4  ;;  %3781 = vmatmul.mubr.msk.bf16.vlgmr.msra.gmra.mxu0 %vm346_vm0, %v4901_v59 }
 0x156   :  { %v4907_v1 = vadd.f32 %v589_v63, %v384_v62  ;;  %2242 = vmatpush1.bf16.msra.mxu1 %v4297_v58  ;;  %2671 = vmatpush1.bf16.msra.mxu0 %v4300_v57  ;;  %v4359_v58 = vld [vmem:[#allocation10 + $0x6ec] ss:$16 sps:$4 sm:$0xff]   ;;  %v4362_v57 = vld [vmem:[#allocation10 + $0x864] ss:$16 sps:$4 sm:$0xff]   ;;  %v4360_v62 = vld [vmem:[#allocation10 + $0x860] ss:$16 sps:$4 sm:$0xff]  }
 0x157   :  { %v386_v17 = vpop.f32.mrf.mxu1  ;;  %v591_v5 = vpop.f32.mrf.mxu0  ;;  %2243 = vmatprep.subr.bf16.mxu1 %v4305_v60  ;;  %2672 = vmatprep.subr.bf16.mxu0 %v4308_v61  ;;  %v173_v60 = vadd.f32 %v4467_v24, %v4887_v27  ;;  %v4357_v61 = vld [vmem:[#allocation10 + $0x6e8] ss:$16 sps:$4 sm:$0xff]   ;;  %v4365_v63 = vld [vmem:[#allocation10 + $0x6cc] ss:$16 sps:$4 sm:$0xff]  }
 0x158   :  { %v4909_v8 = vadd.f32 %v591_v5, %v386_v17  ;;  %2269 = vmatprep.mubr.bf16.mxu1 %v4716_v0  ;;  %2698 = vmatprep.mubr.bf16.mxu0 %v4716_v0  ;;  %v4366_v17 = vld [vmem:[#allocation10 + $0x840] ss:$16 sps:$4 sm:$0xff]   ;;  %v4371_v5 = vld [vmem:[#allocation10 + $0x82c] ss:$16 sps:$4 sm:$0xff]   ;;  %v4369_v27 = vld [vmem:[#allocation10 + $0x828] ss:$16 sps:$4 sm:$0xff]  }
 0x159   :  { %v388_v4 = vpop.f32.mrf.mxu1  ;;  %v593_v9 = vpop.f32.mrf.mxu0  ;;  %v4381_v24 = vld [vmem:[#allocation10 + $0x7a8] ss:$16 sps:$4 sm:$0xff]  }
 0x15a   :  { %2244 = vmatpush1.bf16.msra.mxu1 %v4303_v2  ;;  %2673 = vmatpush1.bf16.msra.mxu0 %v4306_v3  ;;  %v174_v2 = vand.u32 2147483647, %v173_v60  ;;  %v4363_v3 = vld [vmem:[#allocation10 + $0x6c8] ss:$16 sps:$4 sm:$0xff]  }
 0x15b   :  { %v389_v25 = vpop.f32.mrf.mxu1  ;;  %2245 = vmatprep.subr.bf16.mxu1 %v4311_v6  ;;  %2674 = vmatprep.subr.bf16.mxu0 %v4314_v7  ;;  %v594_v14 = vpop.f32.mrf.mxu0  ;;  %v4374_v7 = vld [vmem:[#allocation10 + $0x80c] ss:$16 sps:$4 sm:$0xff]  }
 0x15c   :  { %v4929_v6 = vpack.c.bf16 %v174_v2, %v174_v2 }
 0x15e   :  { %2246 = vmatpush1.bf16.msra.mxu1 %v4309_v10  ;;  %2675 = vmatpush1.bf16.msra.mxu0 %v4312_v11  ;;  %v4372_v11 = vld [vmem:[#allocation10 + $0x808] ss:$16 sps:$4 sm:$0xff]  }
 0x15f   :  { %2247 = vmatprep.subr.bf16.mxu1 %v4317_v12  ;;  %2676 = vmatprep.subr.bf16.mxu0 %v4320_v13  ;;  %v4377_v13 = vld [vmem:[#allocation10 + $0x7ec] ss:$16 sps:$4 sm:$0xff]  }
 0x162   :  { %2248 = vmatpush1.bf16.msra.mxu1 %v4315_v15  ;;  %2677 = vmatpush1.bf16.msra.mxu0 %v4318_v16 }
 0x163   :  { %2249 = vmatprep.subr.bf16.mxu1 %v4323_v18  ;;  %2678 = vmatprep.subr.bf16.mxu0 %v4326_v19 }
 0x166   :  { %2250 = vmatpush1.bf16.msra.mxu1 %v4321_v21  ;;  %2679 = vmatpush1.bf16.msra.mxu0 %v4324_v22  ;;  %v4380_v21 = vld [vmem:[#allocation10 + $0x7cc] ss:$16 sps:$4 sm:$0xff]  }
 0x167   :  { %2251 = vmatprep.subr.bf16.mxu1 %v4329_v20  ;;  %2680 = vmatprep.subr.bf16.mxu0 %v4332_v23  ;;  %v4378_v20 = vld [vmem:[#allocation10 + $0x7c8] ss:$16 sps:$4 sm:$0xff]   ;;  %v4383_v23 = vld [vmem:[#allocation10 + $0x7ac] ss:$16 sps:$4 sm:$0xff]  }
 0x16a   :  { %2252 = vmatpush1.bf16.msra.mxu1 %v4327_v29  ;;  %2681 = vmatpush1.bf16.msra.mxu0 %v4330_v31  ;;  %v4384_v29 = vld [vmem:[#allocation10 + $0x788] ss:$16 sps:$4 sm:$0xff]   ;;  %v4389_v31 = vld [vmem:[#allocation10 + $0x8ec] ss:$16 sps:$4 sm:$0xff]  }
 0x16b   :  { %2476 = vmatprep.subr.bf16.mxu1 %v4335_v32  ;;  %2905 = vmatprep.subr.bf16.mxu0 %v4338_v30  ;;  %v4387_v32 = vld [vmem:[#allocation10 + $0x8e8] ss:$16 sps:$4 sm:$0xff]   ;;  %v4392_v30 = vld [vmem:[#allocation10 + $0x8cc] ss:$16 sps:$4 sm:$0xff]  }
 0x16d   :  { %v4916_v39 = vpop.f32.mrf.mxu1  ;;  %v820_v41 = vpop.f32.mrf.mxu0  ;;  %3756 = vmatmul.mubr.msk.bf16.vlgmr.msra.gmra.mxu1 %vm346_vm0, %v4893_v33  ;;  %3807 = vmatmul.mubr.msk.bf16.vlgmr.msra.gmra.mxu0 %vm346_vm0, %v4914_v34 }
 0x16e   :  { %v868_v42 = vadd.f32 %v820_v41, %v4907_v1  ;;  %2477 = vmatpush1.bf16.msra.mxu1 %v4333_v35  ;;  %2906 = vmatpush1.bf16.msra.mxu0 %v4336_v36  ;;  %v4368_v1 = vld [vmem:[#allocation10 + $0x844] ss:$16 sps:$4 sm:$0xff]  }
 0x16f   :  { %v4923_v44 = vpop.f32.mrf.mxu1  ;;  %v822_v45 = vpop.f32.mrf.mxu0  ;;  %2478 = vmatprep.subr.bf16.mxu1 %v4341_v37  ;;  %2907 = vmatprep.subr.bf16.mxu0 %v4344_v38 }
 0x170   :  { %v869_v47 = vadd.f32 %v822_v45, %v4909_v8  ;;  %2504 = vmatprep.mubr.bf16.mxu1 %v4716_v0  ;;  %2933 = vmatprep.mubr.bf16.mxu0 %v4716_v0 }
 0x171   :  { %v429_v33 = vpop.f32.mrf.mxu1  ;;  %v824_v49 = vpop.f32.mrf.mxu0 }
 0x172   :  { %2479 = vmatpush1.bf16.msra.mxu1 %v4339_v43  ;;  %2908 = vmatpush1.bf16.msra.mxu0 %v4342_v26  ;;  %v4395_v43 = vld [vmem:[#allocation10 + $0x8ac] ss:$16 sps:$4 sm:$0xff]   ;;  %v4396_v49 = vld [vmem:[#allocation10 + $0x888] ss:$16 sps:$4 sm:$0xff]  }
 0x173   :  { %v430_v51 = vpop.f32.mrf.mxu1  ;;  %2480 = vmatprep.subr.bf16.mxu1 %v4347_v40  ;;  %2909 = vmatprep.subr.bf16.mxu0 %v4350_v46  ;;  %v825_v54 = vpop.f32.mrf.mxu0  ;;  %v4393_v46 = vld [vmem:[#allocation10 + $0x8a8] ss:$16 sps:$4 sm:$0xff]   ;;  %v4398_v33 = vld [vmem:[#allocation10 + $0x88c] ss:$16 sps:$4 sm:$0xff]  }
 0x174   :  { %v4402_v51 = vld [vmem:[#allocation10 + $0x848] ss:$16 sps:$4 sm:$0xff]  }
 0x176   :  { %2481 = vmatpush1.bf16.msra.mxu1 %v4345_v48  ;;  %2910 = vmatpush1.bf16.msra.mxu0 %v4348_v50  ;;  %v4401_v48 = vld [vmem:[#allocation10 + $0x86c] ss:$16 sps:$4 sm:$0xff]  }
 0x177   :  { %2482 = vmatprep.subr.bf16.mxu1 %v4353_v52  ;;  %2911 = vmatprep.subr.bf16.mxu0 %v4356_v53  ;;  %v4404_v50 = vld [vmem:[#allocation10 + $0x84c] ss:$16 sps:$4 sm:$0xff]  }
 0x17a   :  { %2483 = vmatpush1.bf16.msra.mxu1 %v4351_v55  ;;  %2912 = vmatpush1.bf16.msra.mxu0 %v4354_v56 }
 0x17b   :  { %2484 = vmatprep.subr.bf16.mxu1 %v4359_v58  ;;  %2913 = vmatprep.subr.bf16.mxu0 %v4362_v57 }
 0x17e   :  { %2485 = vmatpush1.bf16.msra.mxu1 %v4357_v61  ;;  %2914 = vmatpush1.bf16.msra.mxu0 %v4360_v62 }
 0x17f   :  { %2486 = vmatprep.subr.bf16.mxu1 %v4365_v63  ;;  %2915 = vmatprep.subr.bf16.mxu0 %v4368_v1 }
 0x182   :  { %2487 = vmatpush1.bf16.msra.mxu1 %v4363_v3  ;;  %2916 = vmatpush1.bf16.msra.mxu0 %v4366_v17  ;;  %v4405_v17 = vld [vmem:[#allocation13 + $0x78] sm:$0xff]  }
 0x183   :  { %2711 = vmatprep.subr.bf16.mxu1 %v4371_v5  ;;  %3882 = vmatprep.subr.bf16.mxu0 %v4405_v17 }
 0x185   :  { %v630_v8 = vpop.f32.mrf.mxu1  ;;  %v1055_v4 = vpop.f32.mrf.mxu0  ;;  %3782 = vmatmul.mubr.msk.bf16.vlgmr.msra.gmra.mxu1 %vm346_vm0, %v4901_v59  ;;  %3833 = vmatmul.mubr.msk.bf16.vlgmr.msra.gmra.mxu0 %vm346_vm0, %v4929_v6  ;;  %v4375_v59 = vld [vmem:[#allocation10 + $0x7e8] ss:$16 sps:$4 sm:$0xff]  }
 0x186   :  { %v631_v9 = vadd.f32 %v630_v8, %v4916_v39  ;;  %v1103_v10 = vadd.f32 %v1055_v4, %v868_v42  ;;  %2712 = vmatpush1.bf16.msra.mxu1 %v4369_v27  ;;  %2739 = vmatprep.mubr.bf16.mxu1 %v4716_v0  ;;  %v4390_v39 = vld [vmem:[#allocation10 + $0x8c8] ss:$16 sps:$4 sm:$0xff]  }
 0x187   :  { %v632_v25 = vpop.f32.mrf.mxu1  ;;  %v1057_v12 = vpop.f32.mrf.mxu0  ;;  %2713 = vmatprep.subr.bf16.mxu1 %v4374_v7  ;;  %v4406_v7 = vld [vmem:[#allocation13 + $0x38] sm:$0xff]  }
 0x188   :  { %v633_v14 = vadd.f32 %v632_v25, %v4923_v44  ;;  %v1104_v15 = vadd.f32 %v1057_v12, %v869_v47  ;;  %3883 = vmatpush3.bf16.msra.mxu0 %v4406_v7  ;;  %v4407_v25 = vld [vmem:[#allocation13 + $0x70] sm:$0xff]  }
 0x189   :  { %v634_v16 = vpop.f32.mrf.mxu1  ;;  %v1059_v18 = vpop.f32.mrf.mxu0  ;;  %v4408_v12 = vld [vmem:[#allocation13 + $0x30] sm:$0xff]   ;;  %3884 = vmatprep.subr.bf16.mxu0 %v4407_v25 }
 0x18a   :  { %2714 = vmatpush1.bf16.msra.mxu1 %v4372_v11  ;;  %v4410_v16 = vld [vmem:[#allocation13 + $0x28] sm:$0xff]   ;;  %v4411_v18 = vld [vmem:[#allocation13 + $0x60] sm:$0xff]  }
 0x18b   :  { %v635_v19 = vpop.f32.mrf.mxu1  ;;  %2715 = vmatprep.subr.bf16.mxu1 %v4377_v13  ;;  %v1060_v22 = vpop.f32.mrf.mxu0 }
 0x18c   :  { %3885 = vmatpush3.bf16.msra.mxu0 %v4408_v12  ;;  %v4413_v19 = vld [vmem:[#allocation13 + $0x58] sm:$0xff]   ;;  %v4415_v22 = vld [vmem:[#allocation13 + $0x50] sm:$0xff]  }
 0x18e   :  { %2716 = vmatpush1.bf16.msra.mxu1 %v4375_v59  ;;  %v4412_v59 = vld [vmem:[#allocation13 + $0x20] sm:$0xff]  }
 0x18f   :  { %2717 = vmatprep.subr.bf16.mxu1 %v4380_v21  ;;  %v4414_v21 = vld [vmem:[#allocation13 + $0x18] sm:$0xff]  }
 0x192   :  { %2718 = vmatpush1.bf16.msra.mxu1 %v4378_v20  ;;  %v4416_v20 = vld [vmem:[#allocation13 + $0x10] sm:$0xff]  }
 0x193   :  { %2719 = vmatprep.subr.bf16.mxu1 %v4383_v23  ;;  %v4417_v23 = vld [vmem:[#allocation13 + $0x48] sm:$0xff]  }
 0x196   :  { %2720 = vmatpush1.bf16.msra.mxu1 %v4381_v24  ;;  %v4418_v24 = vld [vmem:[#allocation13 + $0x8] sm:$0xff]  }
 0x197   :  { %2721 = vmatprep.subr.bf16.mxu1 %v4386_v28 }
 0x19a   :  { %2722 = vmatpush1.bf16.msra.mxu1 %v4384_v29 }
 0x19b   :  { %2946 = vmatprep.subr.bf16.mxu1 %v4389_v31  ;;  %v4419_v31 = vld [vmem:[#allocation13 + $0x40] sm:$0xff]  }
 0x19d   :  { %v861_v35 = vpop.f32.mrf.mxu1  ;;  %v1290_v36 = vpop.f32.mrf.mxu0  ;;  %3808 = vmatmul.mubr.msk.bf16.vlgmr.msra.gmra.mxu1 %vm346_vm0, %v4914_v34 }
 0x19e   :  { %v870_v37 = vadd.f32 %v861_v35, %v631_v9  ;;  %v1338_v38 = vadd.f32 %v1290_v36, %v1103_v10  ;;  %2947 = vmatpush1.bf16.msra.mxu1 %v4387_v32  ;;  %2974 = vmatprep.mubr.bf16.mxu1 %v4716_v0  ;;  %v4399_v0 = vld [vmem:[#allocation10 + $0x868] ss:$16 sps:$4 sm:$0xff]  }
 0x19f   :  { %v863_v41 = vpop.f32.mrf.mxu1  ;;  %v1292_v42 = vpop.f32.mrf.mxu0  ;;  %2948 = vmatprep.subr.bf16.mxu1 %v4392_v30 }
 0x1a0   :  { %v871_v26 = vadd.f32 %v863_v41, %v633_v14  ;;  %v1339_v44 = vadd.f32 %v1292_v42, %v1104_v15  ;;  %v4409_v15 = vld [vmem:[#allocation13 + $0x68] sm:$0xff]  }
 0x1a1   :  { %v865_v45 = vpop.f32.mrf.mxu1  ;;  %v1294_v40 = vpop.f32.mrf.mxu0  ;;  %3886 = vmatprep.subr.bf16.mxu0 %v4409_v15 }
 0x1a2   :  { %2949 = vmatpush1.bf16.msra.mxu1 %v4390_v39  ;;  %3887 = vmatpush3.bf16.msra.mxu0 %v4410_v16  ;;  %v4420_v39 = vld [vmem:[#allocation13] sm:$0xff]   ;;  %v4421_v40 = vld [vmem:[#allocation13 + $0xf8] sm:$0xff]  }
 0x1a3   :  { %v866_v47 = vpop.f32.mrf.mxu1  ;;  %2950 = vmatprep.subr.bf16.mxu1 %v4395_v43  ;;  %v1295_v34 = vpop.f32.mrf.mxu0  ;;  %3888 = vmatprep.subr.bf16.mxu0 %v4411_v18 }
 0x1a6   :  { %2951 = vmatpush1.bf16.msra.mxu1 %v4393_v46  ;;  %3889 = vmatpush3.bf16.msra.mxu0 %v4412_v59 }
 0x1a7   :  { %2952 = vmatprep.subr.bf16.mxu1 %v4398_v33  ;;  %3890 = vmatprep.subr.bf16.mxu0 %v4413_v19  ;;  %v4422_v33 = vld [vmem:[#allocation13 + $0xb8] sm:$0xff]  }
 0x1aa   :  { %2953 = vmatpush1.bf16.msra.mxu1 %v4396_v49  ;;  %3891 = vmatpush3.bf16.msra.mxu0 %v4414_v21 }
 0x1ab   :  { %2954 = vmatprep.subr.bf16.mxu1 %v4401_v48  ;;  %3892 = vmatprep.subr.bf16.mxu0 %v4415_v22 }
 0x1ae   :  { %2955 = vmatpush1.bf16.msra.mxu1 %v4399_v0  ;;  %3893 = vmatpush3.bf16.msra.mxu0 %v4416_v20 }
 0x1af   :  { %2956 = vmatprep.subr.bf16.mxu1 %v4404_v50  ;;  %3894 = vmatprep.subr.bf16.mxu0 %v4417_v23  ;;  %v2989_v23 = vlaneseq }
 0x1b2   :  { %2957 = vmatpush1.bf16.msra.mxu1 %v4402_v51  ;;  %3895 = vmatpush3.bf16.msra.mxu0 %v4418_v24  ;;  %v2990_v24 = vshrl.u32 %v2989_v23, 7  ;;  %v4717_v23 = vmov 0.0  }
 0x1b3   :  { %3896 = vmatprep.subr.bf16.mxu0 %v4419_v31  ;;  %3904 = vmatprep.subr.bf16.mxu1 %v4421_v40 }
 0x1b5   :  { %v1096_v52 = vpop.f32.mrf.mxu1  ;;  %v1525_v53 = vpop.f32.mrf.mxu0  ;;  %3834 = vmatmul.mubr.msk.bf16.vlgmr.msra.gmra.mxu1 %vm346_vm0, %v4929_v6 }
 0x1b6   :  { %v1105_v54 = vadd.f32 %v1096_v52, %v870_v37  ;;  %v1573_v55 = vadd.f32 %v1525_v53, %v1338_v38  ;;  %3897 = vmatpush3.bf16.msra.mxu0 %v4420_v39  ;;  %3905 = vmatpush3.bf16.msra.mxu1 %v4422_v33  ;;  %v4423_v52 = vld [vmem:[#allocation13 + $0xf0] sm:$0xff]  }
 0x1b7   :  { %v1098_v56 = vpop.f32.mrf.mxu1  ;;  %v1527_v58 = vpop.f32.mrf.mxu0  ;;  %v4424_v53 = vld [vmem:[#allocation13 + $0xb0] sm:$0xff]   ;;  %3906 = vmatprep.subr.bf16.mxu1 %v4423_v52  ;;  %3935 = vmatprep.subr.bf16.mxu0 %v4717_v23 }
 0x1b8   :  { %v1106_v57 = vadd.f32 %v1098_v56, %v871_v26  ;;  %v1574_v60 = vadd.f32 %v1527_v58, %v1339_v44  ;;  %v4425_v56 = vld [vmem:[#allocation13 + $0xe8] sm:$0xff]  }
 0x1b9   :  { %v1100_v61 = vpop.f32.mrf.mxu1  ;;  %v1529_v62 = vpop.f32.mrf.mxu0  ;;  %v4426_v58 = vld [vmem:[#allocation13 + $0xa8] sm:$0xff]  }
 0x1ba   :  { %3907 = vmatpush3.bf16.msra.mxu1 %v4424_v53  ;;  %v4429_v61 = vld [vmem:[#allocation13 + $0xd8] sm:$0xff]  }
 0x1bb   :  { %v1101_v63 = vpop.f32.mrf.mxu1  ;;  %v1530_v1 = vpop.f32.mrf.mxu0  ;;  %3908 = vmatprep.subr.bf16.mxu1 %v4425_v56  ;;  %v4430_v62 = vld [vmem:[#allocation13 + $0x98] sm:$0xff]  }
 0x1bc   :  { %v4431_v63 = vld [vmem:[#allocation13 + $0xd0] sm:$0xff]  }
 0x1bd   :  { %v4432_v1 = vld [vmem:[#allocation13 + $0x90] sm:$0xff]  }
 0x1be   :  { %3909 = vmatpush3.bf16.msra.mxu1 %v4426_v58 }
 0x1cd   :  { %v1331_v2 = vpop.f32.mrf.mxu1  ;;  %v1760_v3 = vpop.f32.mrf.mxu0 }
 0x1ce   :  { %v1340_v5 = vadd.f32 %v1331_v2, %v1105_v54  ;;  %v1808_v27 = vadd.f32 %v1760_v3, %v1573_v55  ;;  %v4433_v2 = vld [vmem:[#allocation13 + $0xc8] sm:$0xff]  }
 0x1cf   :  { %v1333_v8 = vpop.f32.mrf.mxu1  ;;  %v1762_v4 = vpop.f32.mrf.mxu0  ;;  %v4434_v3 = vld [vmem:[#allocation13 + $0x88] sm:$0xff]  }
 0x1d0   :  { %v1341_v6 = vadd.f32 %v1333_v8, %v1106_v57  ;;  %v1809_v9 = vadd.f32 %v1762_v4, %v1574_v60  ;;  %v4427_v57 = vld [vmem:[#allocation13 + $0xe0] sm:$0xff]  }
 0x1d1   :  { %v1335_v10 = vpop.f32.mrf.mxu1  ;;  %v1764_v11 = vpop.f32.mrf.mxu0  ;;  %v4428_v60 = vld [vmem:[#allocation13 + $0xa0] sm:$0xff]   ;;  %3910 = vmatprep.subr.bf16.mxu1 %v4427_v57 }
 0x1d2   :  { %3911 = vmatpush3.bf16.msra.mxu1 %v4428_v60 }
 0x1d3   :  { %v1336_v13 = vpop.f32.mrf.mxu1  ;;  %v1765_v14 = vpop.f32.mrf.mxu0  ;;  %3912 = vmatprep.subr.bf16.mxu1 %v4429_v61 }
 0x1d6   :  { %3913 = vmatpush3.bf16.msra.mxu1 %v4430_v62  ;;  %v2999_v62 = vsub.s32 2, %v2990_v24 }
 0x1d7   :  { %3914 = vmatprep.subr.bf16.mxu1 %v4431_v63 }
 0x1da   :  { %3915 = vmatpush3.bf16.msra.mxu1 %v4432_v1  ;;  %v3003_v1 = vsub.s32 3, %v2990_v24 }
 0x1db   :  { %3916 = vmatprep.subr.bf16.mxu1 %v4433_v2 }
 0x1de   :  { %3917 = vmatpush3.bf16.msra.mxu1 %v4434_v3 }
 0x1e5   :  { %v1566_v28 = vpop.f32.mrf.mxu1  ;;  %v1995_v29 = vpop.f32.mrf.mxu0 }
 0x1e6   :  { %v1575_v32 = vadd.f32 %v1566_v28, %v1340_v5  ;;  %v2043_v30 = vadd.f32 %v1995_v29, %v1808_v27  ;;  %v4435_v27 = vld [vmem:[#allocation13 + $0xc0] sm:$0xff]   ;;  %v2991_v28 = vsub.s32 0, %v2990_v24  ;;  %v2987_v29 = vld [vmem:[#allocation11] sm:$0xf] }
 0x1e7   :  { %v1568_v35 = vpop.f32.mrf.mxu1  ;;  %v1997_v36 = vpop.f32.mrf.mxu0  ;;  %3918 = vmatprep.subr.bf16.mxu1 %v4435_v27 }
 0x1e8   :  { %v1576_v37 = vadd.f32 %v1568_v35, %v1341_v6  ;;  %v2044_v38 = vadd.f32 %v1997_v36, %v1809_v9  ;;  %v4436_v9 = vld [vmem:[#allocation13 + $0x80] sm:$0xff]   ;;  %v2992_v36 = vrot.slane %v2987_v29, %v2991_v28  ;;  %v4439_v28 = vld [vmem:[#allocation16 + $0x28] sm:$0xff]  }
 0x1e9   :  { %v1570_v41 = vpop.f32.mrf.mxu1  ;;  %v1999_v42 = vpop.f32.mrf.mxu0  ;;  %3919 = vmatpush3.bf16.msra.mxu1 %v4436_v9 }
 0x1eb   :  { %v1571_v43 = vpop.f32.mrf.mxu1  ;;  %v2000_v26 = vpop.f32.mrf.mxu0 }
 0x1fd   :  { %v1801_v44 = vpop.f32.mrf.mxu1  ;;  %v2230_v45 = vpop.f32.mrf.mxu0 }
 0x1fe   :  { %v1810_v46 = vadd.f32 %v1801_v44, %v1575_v32  ;;  %v4943_v47 = vadd.f32 %v2230_v45, %v2043_v30  ;;  %v2995_v32 = vsub.s32 1, %v2990_v24  ;;  %v4438_v24 = vld [vmem:[#allocation16 + $0x30] sm:$0xff]  }
 0x1ff   :  { %v1803_v34 = vpop.f32.mrf.mxu1  ;;  %v2232_v49 = vpop.f32.mrf.mxu0 }
 0x200   :  { %v1811_v48 = vadd.f32 %v1803_v34, %v1576_v37  ;;  %v2279_v0 = vadd.f32 %v2232_v49, %v2044_v38  ;;  %v2996_v42 = vrot.slane %v2987_v29, %v2995_v32  ;;  %v4442_v32 = vld [vmem:[#allocation16 + $0x10] sm:$0xff]  }
 0x201   :  { %v1805_v50 = vpop.f32.mrf.mxu1  ;;  %v2234_v51 = vpop.f32.mrf.mxu0 }
 0x203   :  { %v1806_v54 = vpop.f32.mrf.mxu1  ;;  %v2235_v55 = vpop.f32.mrf.mxu0 }
 0x215   :  { %v2036_v17 = vpop.f32.mrf.mxu1  ;;  %v2465_v5 = vpop.f32.mrf.mxu0 }
 0x216   :  { %v2045_v7 = vadd.f32 %v2036_v17, %v1810_v46  ;;  %v2513_v31 = vadd.f32 %v2465_v5, %v4943_v47  ;;  %v3000_v17 = vrot.slane %v2987_v29, %v2999_v62 }
 0x217   :  { %v2038_v8 = vpop.f32.mrf.mxu1  ;;  %v2467_v4 = vpop.f32.mrf.mxu0 }
 0x218   :  { %v2046_v6 = vadd.f32 %v2038_v8, %v1811_v48  ;;  %v2514_v30 = vadd.f32 %v2467_v4, %v2279_v0  ;;  %v3004_v8 = vrot.slane %v2987_v29, %v3003_v1  ;;  %v4440_v29 = vld [vmem:[#allocation16 + $0x20] sm:$0xff]  }
 0x219   :  { %v2040_v10 = vpop.f32.mrf.mxu1  ;;  %v2469_v11 = vpop.f32.mrf.mxu0 }
 0x21b   :  { %v2041_v25 = vpop.f32.mrf.mxu1  ;;  %v2470_v12 = vpop.f32.mrf.mxu0 }
 0x22d   :  { %v2271_v13 = vpop.f32.mrf.mxu1  ;;  %v2700_v14 = vpop.f32.mrf.mxu0 }
 0x22e   :  { %v2280_v15 = vadd.f32 %v2271_v13, %v2045_v7  ;;  %v2748_v35 = vadd.f32 %v2700_v14, %v2513_v31  ;;  %v4441_v31 = vld [vmem:[#allocation16 + $0x18] sm:$0xff]  }
 0x22f   :  { %v2273_v16 = vpop.f32.mrf.mxu1  ;;  %v2702_v18 = vpop.f32.mrf.mxu0 }
 0x230   :  { %v2281_v59 = vadd.f32 %v2273_v16, %v2046_v6  ;;  %v2749_v39 = vadd.f32 %v2702_v18, %v2514_v30  ;;  %v4443_v30 = vld [vmem:[#allocation16 + $0x8] sm:$0xff]  }
 0x231   :  { %v2275_v19 = vpop.f32.mrf.mxu1  ;;  %v2704_v21 = vpop.f32.mrf.mxu0 }
 0x233   :  { %v2276_v22 = vpop.f32.mrf.mxu1  ;;  %v2705_v20 = vpop.f32.mrf.mxu0 }
 0x234   :  { %v4437_v20 = vld [vmem:[#allocation16 + $0x38] sm:$0xff]  }
 0x245   :  { %v2506_v37 = vpop.f32.mrf.mxu1  ;;  %v2935_v38 = vpop.f32.mrf.mxu0 }
 0x246   :  { %v2983_v41 = vadd.f32 %v2935_v38, %v2748_v35  ;;  %v2515_v63 = vadd.f32 %v2506_v37, %v2280_v15  ;;  %v4444_v35 = vld [vmem:[#allocation16] sm:$0xff]  }
 0x247   :  { %v2508_v43 = vpop.f32.mrf.mxu1  ;;  %v2937_v26 = vpop.f32.mrf.mxu0 }
 0x248   :  { %v3009_v44 = vadd.f32 %v2992_v36, %v2983_v41  ;;  %v2984_v45 = vadd.f32 %v2937_v26, %v2749_v39  ;;  %v2516_v2 = vadd.f32 %v2508_v43, %v2281_v59 }
 0x249   :  { %v2510_v40 = vpop.f32.mrf.mxu1  ;;  %v2939_v46 = vpop.f32.mrf.mxu0 }
 0x24a   :  { %v3835_v33 = vmul.f32 -1.442695, %v3009_v44  ;;  %v3010_v34 = vadd.f32 %v2996_v42, %v2984_v45  ;;  %v3839_v42 = vld [vmem:[#allocation14] ss:$0 sm:$0xff] }
 0x24b   :  { %v2511_v49 = vpop.f32.mrf.mxu1  ;;  %v2940_v48 = vpop.f32.mrf.mxu0 }
 0x24c   :  { %4445 = vpow2.f32 %v3835_v33  ;;  %v3836_v47 = vmul.f32 -1.442695, %v3010_v34 }
 0x24e   :  { %4447 = vpow2.f32 %v3836_v47 }
 0x259   :  { %v4446_v0 = vpop.eup %4445 }
 0x25a   :  { %v3025_v50 = vadd.f32 1.0, %v4446_v0 }
 0x25b   :  { %v4448_v51 = vpop.eup %4447 }
 0x25c   :  { %v3026_v52 = vadd.f32 1.0, %v4448_v51  ;;  %4449 = vrcp.f32 %v3025_v50  ;;  %v3873_v50 = vld [vmem:[#allocation17] ss:$0 sm:$0xff] }
 0x25d   :  { %v2741_v53 = vpop.f32.mrf.mxu1 }
 0x25e   :  { %4451 = vrcp.f32 %v3026_v52  ;;  %v2750_v3 = vadd.f32 %v2741_v53, %v2515_v63 }
 0x25f   :  { %v2743_v54 = vpop.f32.mrf.mxu1 }
 0x260   :  { %v2751_v27 = vadd.f32 %v2743_v54, %v2516_v2 }
 0x261   :  { %v2745_v55 = vpop.f32.mrf.mxu1 }
 0x263   :  { %v2746_v56 = vpop.f32.mrf.mxu1 }
 0x269   :  { %v4450_v58 = vpop.eup %4449 }
 0x26a   :  { %v3037_v61 = vpack.c.bf16 %v4450_v58, %v4450_v58 }
 0x26b   :  { %v4452_v57 = vpop.eup %4451 }
 0x26c   :  { %v3038_v60 = vpack.c.bf16 %v4452_v57, %v4452_v57 }
 0x26e   :  { %3336 = vmatprep.mubr.bf16.mxu0 %v3038_v60 }
 0x26f   :  { %3337 = vmatmul.mubr.bf16.vlgmr.msra.gmra.mxu0 %v3037_v61 }
 0x270   :  { %3936 = vmatpush3.bf16.msra.mxu0 %v4437_v20  ;;  %3951 = vmatprep.mubr.msk.bf16.mxu0 %vm4718_vm1, %v4717_v23 }
 0x271   :  { %3937 = vmatprep.subr.bf16.mxu0 %v4717_v23 }
 0x274   :  { %3938 = vmatpush3.bf16.msra.mxu0 %v4438_v24 }
 0x275   :  { %v2976_v5 = vpop.f32.mrf.mxu1  ;;  %3939 = vmatprep.subr.bf16.mxu0 %v4717_v23 }
 0x276   :  { %v2985_v7 = vadd.f32 %v2976_v5, %v2750_v3 }
 0x277   :  { %v2978_v4 = vpop.f32.mrf.mxu1 }
 0x278   :  { %v3011_v6 = vadd.f32 %v3000_v17, %v2985_v7  ;;  %v2986_v9 = vadd.f32 %v2978_v4, %v2751_v27  ;;  %3940 = vmatpush3.bf16.msra.mxu0 %v4439_v28 }
 0x279   :  { %v2980_v10 = vpop.f32.mrf.mxu1  ;;  %3941 = vmatprep.subr.bf16.mxu0 %v4717_v23 }
 0x27a   :  { %v3837_v11 = vmul.f32 -1.442695, %v3011_v6  ;;  %v3012_v25 = vadd.f32 %v3004_v8, %v2986_v9 }
 0x27b   :  { %v2981_v12 = vpop.f32.mrf.mxu1 }
 0x27c   :  { %4453 = vpow2.f32 %v3837_v11  ;;  %v3838_v13 = vmul.f32 -1.442695, %v3012_v25  ;;  %3942 = vmatpush3.bf16.msra.mxu0 %v4440_v29 }
 0x27d   :  { %3943 = vmatprep.subr.bf16.mxu0 %v4717_v23 }
 0x27e   :  { %4455 = vpow2.f32 %v3838_v13 }
 0x280   :  { %3944 = vmatpush3.bf16.msra.mxu0 %v4441_v31 }
 0x281   :  { %3945 = vmatprep.subr.bf16.mxu0 %v4717_v23 }
 0x284   :  { %3946 = vmatpush3.bf16.msra.mxu0 %v4442_v32 }
 0x285   :  { %3947 = vmatprep.subr.bf16.mxu0 %v4717_v23 }
 0x288   :  { %3948 = vmatpush3.bf16.msra.mxu0 %v4443_v30 }
 0x289   :  { %v4454_v14 = vpop.eup %4453  ;;  %3949 = vmatprep.subr.bf16.mxu0 %v4717_v23 }
 0x28a   :  { %v3027_v15 = vadd.f32 1.0, %v4454_v14 }
 0x28b   :  { %v4456_v16 = vpop.eup %4455 }
 0x28c   :  { %v3028_v18 = vadd.f32 1.0, %v4456_v16  ;;  %4457 = vrcp.f32 %v3027_v15  ;;  %3950 = vmatpush3.bf16.msra.mxu0 %v4444_v35 }
 0x28e   :  { %4459 = vrcp.f32 %v3028_v18 }
 0x299   :  { %v4458_v59 = vpop.eup %4457 }
 0x29a   :  { %v3039_v22 = vpack.c.bf16 %v4458_v59, %v4458_v59 }
 0x29b   :  { %v4460_v19 = vpop.eup %4459 }
 0x29c   :  { %v3040_v21 = vpack.c.bf16 %v4460_v19, %v4460_v19 }
 0x29e   :  { %3376 = vmatprep.mubr.bf16.mxu1 %v3040_v21 }
 0x29f   :  { %3377 = vmatmul.mubr.bf16.vlgmr.msra.gmra.mxu1 %v3039_v22 }
 0x32f   :  { %v3898_v36 = vpop.f32.mrf.mxu0 }
 0x331   :  { %v3899_v37 = vpop.f32.mrf.mxu0 }
 0x332   :  { %v3900_v41 = vadd.f32 %v3899_v37, %v3898_v36 }
 0x333   :  { %v3901_v38 = vpop.f32.mrf.mxu0 }
 0x334   :  { %v3339_v44 = vadd.f32 %v3900_v41, %v3839_v42 }
 0x335   :  { %v3902_v39 = vpop.f32.mrf.mxu0 }
 0x35f   :  { %v3920_v43 = vpop.f32.mrf.mxu1 }
 0x361   :  { %v3921_v26 = vpop.f32.mrf.mxu1 }
 0x362   :  { %v3922_v45 = vadd.f32 %v3921_v26, %v3920_v43 }
 0x363   :  { %v3923_v40 = vpop.f32.mrf.mxu1 }
 0x364   :  { %v3379_v46 = vadd.f32 %v3922_v45, %v3339_v44 }
 0x365   :  { %v3924_v33 = vpop.f32.mrf.mxu1 }
 0x366   :  { %v3872_v34 = vmul.f32 -1.442695, %v3379_v46 }
 0x368   :  { %4461 = vpow2.f32 %v3872_v34 }
 0x375   :  { %v4462_v49 = vpop.eup %4461 }
 0x376   :  { %v3387_v48 = vadd.f32 1.0, %v4462_v49 }
 0x378   :  { %4463 = vrcp.f32 %v3387_v48 }
 0x385   :  { %v4464_v47 = vpop.eup %4463 }
 0x386   :  { %v3390_v0 = vpack.c.bf16 %v4464_v47, %v4464_v47 }
 0x388   :  { %3952 = vmatmul.mubr.bf16.vlgmr.msra.gmra.mxu0 %v3390_v0 }
 0x448   :  { %v3496_v51 = vpop.f32.mrf.mxu0 }
 0x449   :  { %v3497_v52 = vadd.f32 %v3873_v50, %v3496_v51 }
 0x44a   :  { %v3953_v53 = vpop.f32.mrf.mxu0 }
 0x44b   :  { %3502 = vst [vmem:[#allocation19] sm:$0xff] %v3497_v52 }
 0x44c   :  { %v3499_v54 = vpop.f32.mrf.mxu0 }
 0x44d   :  { %4679 = shalt.err (!%p4676_p12)
}
 0x44e   :  { %3512 = dma.vmem_to_hbm [thread:$0]  %s3510_s9, 128, %s4959_s10, [#allocation4]   ;;  %v3954_v55 = vpop.f32.mrf.mxu0 }
 0x44f   :  { %4700 = dma.done.wait [#allocation4], 128  }
 0x450   :  { %4701 = vsyncadd [#allocation4], 4294967168 }
 0x451   :  { %3516 = vsyncpa [#allocation3], 1 }
 0x452   :  { %3517 = vsyncpa [#allocation6], 1 }
 0x453   :  { %3518 = vsyncpa [#allocation9], 1 }
 0x454   :  { %3519 = vsyncpa [#allocation12], 1 }
 0x455   :  { %3520 = vsyncpa [#allocation15], 1 }
 0x456   :  { %3521 = vsyncpa [#allocation18], 1 }
 0x457   :  { %3522 = vsyncpa [#allocation4], 1 }

</bundles_post_ra>
